<compile_context>
chip_gen: v7x
topology: tpu7x:2x2x1
jax: 0.10.0
libtpu: 0.0.40
codegen_flags: <defaults>
</compile_context>

<pallas_src>
import jax
import jax.numpy as jnp
from jax import lax
from jax.experimental import pallas as pl
from jax.experimental.pallas import tpu as pltpu


# ------------------------------ Pallas kernels -------------------------------

def _deline_pool_kernel(fd_ref, x_ref, w_ref, b_ref, fmax_ref, xmax_ref):
    # fd_ref : (1, 4, Wp, 256)  4 image rows of F_depth, W-packed (dx, c) on lanes
    # x_ref  : (1, 4, Wp, 128)  4 image rows of x
    # w_ref  : (256, 128)       block-diagonal deline weight (one (64,32) per dx)
    # b_ref  : (1, 128)         deline bias tiled over dx
    # fmax_ref / xmax_ref : (1, 1, Wp, 32)  pooled rows
    w = w_ref[...]
    b = b_ref[...]
    # deline applied per image row (per-pixel matmul), pool over the 4 rows ...
    f0 = jnp.dot(fd_ref[0, 0], w, preferred_element_type=jnp.float32) + b
    f1 = jnp.dot(fd_ref[0, 1], w, preferred_element_type=jnp.float32) + b
    f2 = jnp.dot(fd_ref[0, 2], w, preferred_element_type=jnp.float32) + b
    f3 = jnp.dot(fd_ref[0, 3], w, preferred_element_type=jnp.float32) + b
    fh = jnp.maximum(jnp.maximum(f0, f1), jnp.maximum(f2, f3))        # (Wp, 128)
    # ... then pool over the 4 columns of the window (static lane slices).
    fmax_ref[0, 0] = jnp.maximum(
        jnp.maximum(fh[:, 0:32], fh[:, 32:64]),
        jnp.maximum(fh[:, 64:96], fh[:, 96:128])).astype(fmax_ref.dtype)

    xh = jnp.maximum(jnp.maximum(x_ref[0, 0], x_ref[0, 1]),
                     jnp.maximum(x_ref[0, 2], x_ref[0, 3]))           # (Wp, 128)
    xmax_ref[0, 0] = jnp.maximum(
        jnp.maximum(xh[:, 0:32], xh[:, 32:64]),
        jnp.maximum(xh[:, 64:96], xh[:, 96:128])).astype(xmax_ref.dtype)


def _attention_kernel(q_ref, kv_ref, o_ref):
    # q_ref: (1, tq, 32) query chunk, kv_ref: (1, L, 32) keys==values, o: (1, tq, 32)
    q = q_ref[0]
    kv = kv_ref[0]
    s = lax.dot_general(q, kv, (((1,), (1,)), ((), ())),
                        preferred_element_type=jnp.float32)           # (tq, L)
    s = s - jnp.max(s, axis=-1, keepdims=True)
    p = jnp.exp(s)
    a = p * pl.reciprocal(jnp.sum(p, axis=-1, keepdims=True), approx=True)
    o_ref[0] = jnp.dot(a, kv, preferred_element_type=jnp.float32).astype(o_ref.dtype)


def _fused_output_kernel(x_ref, fd_ref, a_ref, w1_ref, w2_ref, wg_ref, b_ref, o_ref):
    # out = fusion1(cat(x, deline(F_depth), gamma * dconv(attn_out)))
    #     = x @ W1 + F_depth @ (Wdeline @ W2) + attn @ (gamma * Wdconv @ W3) + b
    # x_ref : (1, 4, Wp, 128), fd_ref: (1, 4, Wp, 256), a_ref: (1, 1, Wp, 32)
    # o_ref : (1, 4, Wp, 256)  (W-packed 64-channel output)
    w1 = w1_ref[...]            # (128, 256) block-diagonal
    w2 = w2_ref[...]            # (256, 256) block-diagonal (deline folded in)
    b = b_ref[...]              # (1, 256)
    av = a_ref[0, 0]            # (Wp, 32)   attention output for this pooled row
    for dy in range(4):
        row = (jnp.dot(x_ref[0, dy], w1, preferred_element_type=jnp.float32)
               + jnp.dot(fd_ref[0, dy], w2, preferred_element_type=jnp.float32)
               + jnp.dot(av, wg_ref[dy], preferred_element_type=jnp.float32)
               + b)
        o_ref[0, dy] = row.astype(o_ref.dtype)


# ---------------------------- pallas_call wrappers ---------------------------

def _parallel(n):
    return pltpu.CompilerParams(dimension_semantics=("parallel",) * n)


def _pick_tq(L):
    for cand in (512, 256, 128, 64, 32, 16, 8):
        if L % cand == 0:
            return cand
    return L


def deline_and_pools(fd4, x4, wdl4, bdl4):
    """Fused deline 1x1 conv + 4x4/4 maxpool of deline output and of x."""
    B, H, Wp, _ = fd4.shape
    Hp = H // 4
    return pl.pallas_call(
        _deline_pool_kernel,
        out_shape=(jax.ShapeDtypeStruct((B, Hp, Wp, 32), jnp.float32),
                   jax.ShapeDtypeStruct((B, Hp, Wp, 32), jnp.float32)),
        grid=(B, Hp),
        in_specs=[
            pl.BlockSpec((1, 4, Wp, 256), lambda b, h: (b, h, 0, 0)),
            pl.BlockSpec((1, 4, Wp, 128), lambda b, h: (b, h, 0, 0)),
            pl.BlockSpec((256, 128), lambda b, h: (0, 0)),
            pl.BlockSpec((1, 128), lambda b, h: (0, 0)),
        ],
        out_specs=(pl.BlockSpec((1, 1, Wp, 32), lambda b, h: (b, h, 0, 0)),
                   pl.BlockSpec((1, 1, Wp, 32), lambda b, h: (b, h, 0, 0))),
        compiler_params=_parallel(2),
    )(fd4, x4, wdl4, bdl4)


def position_attention(xmax_flat, fmax_flat):
    """xmax_flat, fmax_flat: (B, L, 32) -> (B, L, 32); grid over (batch, q-chunks)."""
    B, L, C = xmax_flat.shape
    tq = _pick_tq(L)
    return pl.pallas_call(
        _attention_kernel,
        out_shape=jax.ShapeDtypeStruct((B, L, C), jnp.float32),
        grid=(B, L // tq),
        in_specs=[
            pl.BlockSpec((1, tq, C), lambda b, i: (b, i, 0)),
            pl.BlockSpec((1, L, C), lambda b, i: (b, 0, 0)),
        ],
        out_specs=pl.BlockSpec((1, tq, C), lambda b, i: (b, i, 0)),
        compiler_params=_parallel(2),
    )(xmax_flat, fmax_flat)


def fused_output(x4, fd4, attn, w1big, w2big, wg, btile):
    """dconv + gamma + concat + fusion1 fused into one sum-of-matmuls kernel."""
    B, H, Wp, _ = x4.shape
    Hp = H // 4
    return pl.pallas_call(
        _fused_output_kernel,
        out_shape=jax.ShapeDtypeStruct((B, H, Wp, 256), jnp.float32),
        grid=(B, Hp),
        in_specs=[
            pl.BlockSpec((1, 4, Wp, 128), lambda b, h: (b, h, 0, 0)),
            pl.BlockSpec((1, 4, Wp, 256), lambda b, h: (b, h, 0, 0)),
            pl.BlockSpec((1, 1, Wp, 32), lambda b, h: (b, h, 0, 0)),
            pl.BlockSpec((128, 256), lambda b, h: (0, 0)),
            pl.BlockSpec((256, 256), lambda b, h: (0, 0)),
            pl.BlockSpec((4, 32, 256), lambda b, h: (0, 0, 0)),
            pl.BlockSpec((1, 256), lambda b, h: (0, 0)),
        ],
        out_specs=pl.BlockSpec((1, 4, Wp, 256), lambda b, h: (b, h, 0, 0)),
        compiler_params=_parallel(2),
    )(x4, fd4, attn, w1big, w2big, wg, btile)


# -------------------------------- Parameters ---------------------------------

def init_params(key):
    k = jax.random.split(key, 5)
    return {
        # nn.Conv2d(64, 32, 1): weight (out, in), bias (out,)
        "w_deline": 0.05 * jax.random.normal(k[0], (32, 64), jnp.float32),
        "b_deline": 0.05 * jax.random.normal(k[1], (32,), jnp.float32),
        # nn.ConvTranspose2d(32, 32, 4, stride=4, bias=False): weight (in, out, kh, kw)
        "w_dconv": 0.05 * jax.random.normal(k[2], (32, 32, 4, 4), jnp.float32),
        # nn.Parameter(torch.zeros(1))
        "gamma": jnp.zeros((1,), jnp.float32),
        # nn.Conv2d(96, 64, 1): weight (out, in), bias (out,)
        "w_fusion1": 0.05 * jax.random.normal(k[3], (64, 96), jnp.float32),
        "b_fusion1": 0.05 * jax.random.normal(k[4], (64,), jnp.float32),
    }


# --------------------------------- Forward -----------------------------------

def pam_shallow2depth(params, x, f_depth):
    """x: (B, 32, H, W) NCHW, f_depth: (B, 64, H, W) NCHW -> (B, 64, H, W) NCHW."""
    B, Cx, H, W = x.shape
    assert Cx == 32 and f_depth.shape[1] == 64
    assert H % 4 == 0 and W % 4 == 0
    Hp, Wp = H // 4, W // 4
    L = Hp * Wp

    # NCHW -> NHWC -> W-packed (the reshape is a free contiguous reinterpret).
    x4 = jnp.transpose(x, (0, 2, 3, 1)).reshape(B, H, Wp, 4 * 32)
    fd4 = jnp.transpose(f_depth, (0, 2, 3, 1)).reshape(B, H, Wp, 4 * 64)

    # ---- tiny host-side weight folding (all O(1)-sized tensors) ----
    eye4 = jnp.eye(4, dtype=jnp.float32)
    wdl_io = params["w_deline"].T                                   # (64, 32) in->out
    wdl4 = jnp.kron(eye4, wdl_io)                                   # (256, 128) block-diag
    bdl4 = jnp.tile(params["b_deline"], 4).reshape(1, 128)

    wf_io = params["w_fusion1"].T                                   # (96, 64) in->out
    w1, w2f, w3f = wf_io[0:32], wf_io[32:64], wf_io[64:96]
    w1big = jnp.kron(eye4, w1)                                      # (128, 256)
    w2big = jnp.kron(eye4, wdl_io @ w2f)                            # (256, 256) deline folded
    # gamma * (ConvTranspose weight composed with the fusion slice for F_strength_0)
    wg = (params["gamma"][0]
          * jnp.einsum("cuyx,uo->ycxo", params["w_dconv"], w3f)).reshape(4, 32, 256)
    btile = jnp.tile(params["b_fusion1"] + params["b_deline"] @ w2f, 4).reshape(1, 256)

    # ---- kernel 1: deline + both 4x4 max-pools (F_depth0 never hits HBM) ----
    f_max, x_max = deline_and_pools(fd4, x4, wdl4, bdl4)            # (B, Hp, Wp, 32) each

    # ---- kernel 2: position attention over pooled positions ----
    attn = position_attention(x_max.reshape(B, L, 32),
                              f_max.reshape(B, L, 32))              # (B, L, 32)

    # ---- kernel 3: dconv + gamma + concat + fusion1 as one sum-of-matmuls ----
    out4 = fused_output(x4, fd4, attn.reshape(B, Hp, Wp, 32),
                        w1big, w2big, wg, btile)                    # (B, H, Wp, 256)

    return out4.reshape(B, H, W, 64).transpose(0, 3, 1, 2)          # back to NCHW


# ------------------------------ Plain-JAX reference ---------------------------

def _reference(params, x, f_depth):
    """Direct jnp mirror of the PyTorch forward, used as a sanity check."""
    B, _, H, W = x.shape
    fd0 = (jnp.einsum("oc,bchw->bohw", params["w_deline"], f_depth)
           + params["b_deline"][None, :, None, None])

    def pool(a):
        b_, c_, h_, w_ = a.shape
        return jnp.max(a.reshape(b_, c_, h_ // 4, 4, w_ // 4, 4), axis=(3, 5))

    fmax, xmax = pool(fd0), pool(x)
    b_, c_, hp, wp = xmax.shape
    L = hp * wp
    q = xmax.reshape(B, c_, L).transpose(0, 2, 1)                   # (B, L, C)
    k = fmax.reshape(B, c_, L)                                      # (B, C, L)
    att = jax.nn.softmax(jnp.einsum("blc,bcj->blj", q, k), axis=-1)
    v = fmax.reshape(B, c_, L)
    out = jnp.einsum("bcj,blj->bcl", v, att).reshape(B, c_, hp, wp)
    up = jnp.einsum("bchw,cdyx->bdhywx", out, params["w_dconv"]).reshape(B, 32, hp * 4, wp * 4)
    fs0 = params["gamma"][0] * up
    cat = jnp.concatenate([x, fd0, fs0], axis=1)                    # (B, 96, H, W)
    return (jnp.einsum("oc,bchw->bohw", params["w_fusion1"], cat)
            + params["b_fusion1"][None, :, None, None])


# ----------------------------------- Main -------------------------------------

if __name__ == "__main__":
    key = jax.random.PRNGKey(0)
    kp, kx, kf = jax.random.split(key, 3)

    params = init_params(kp)
    # gamma is zero-initialised in the module; set it non-zero here so the
    # attention -> dconv -> fusion path actually contributes to the check.
    params["gamma"] = jnp.full((1,), 0.5, jnp.float32)

    x = jax.random.normal(kx, (2, 32, 16, 16), jnp.float32)
    f_depth = jax.random.normal(kf, (2, 64, 16, 16), jnp.float32)

    fwd = jax.jit(pam_shallow2depth)
    out = fwd(params, x, f_depth)
    jax.block_until_ready(out)

    assert out.shape == (2, 64, 16, 16)
    ref = _reference(params, x, f_depth)
    assert bool(jnp.allclose(out, ref, atol=1e-2, rtol=1e-2)), "mismatch vs reference"
    print("KERNEL_OK")
</pallas_src>

<mosaic_0001>
module attributes {stable_mosaic.version = 11 : i64} {
  func.func @_deline_pool_kernel(%arg0: i32, %arg1: i32, %arg2: memref<1x4x4x256xf32, #tpu.memory_space<vmem>>, %arg3: memref<1x4x4x128xf32, #tpu.memory_space<vmem>>, %arg4: memref<256x128xf32, #tpu.memory_space<vmem>>, %arg5: memref<1x128xf32, #tpu.memory_space<vmem>>, %arg6: memref<1x1x4x32xf32, #tpu.memory_space<vmem>>, %arg7: memref<1x1x4x32xf32, #tpu.memory_space<vmem>>) attributes {dimension_semantics = [#tpu.dimension_semantics<parallel>, #tpu.dimension_semantics<parallel>], iteration_bounds = array<i64: 2, 4>, scalar_prefetch = 0 : i64, scratch_operands = 0 : i64, tpu.core_type = #tpu.core_type<tc>, window_params = [{transform_indices = @transform_0, window_bounds = array<i64: 1, 4, 4, 256>}, {transform_indices = @transform_1, window_bounds = array<i64: 1, 4, 4, 128>}, {pipeline_mode = #tpu.pipeline_mode<synchronous>, transform_indices = @transform_2, window_bounds = array<i64: 256, 128>}, {pipeline_mode = #tpu.pipeline_mode<synchronous>, transform_indices = @transform_3, window_bounds = array<i64: 1, 128>}, {transform_indices = @transform_4, window_bounds = array<i64: 1, 1, 4, 32>}, {transform_indices = @transform_5, window_bounds = array<i64: 1, 1, 4, 32>}]} {
    %c0 = arith.constant 0 : index
    %c0_0 = arith.constant 0 : index
    %0 = vector.load %arg4[%c0, %c0_0] : memref<256x128xf32, #tpu.memory_space<vmem>>, vector<256x128xf32>
    %c0_1 = arith.constant 0 : index
    %c0_2 = arith.constant 0 : index
    %1 = vector.load %arg5[%c0_1, %c0_2] : memref<1x128xf32, #tpu.memory_space<vmem>>, vector<1x128xf32>
    %c0_3 = arith.constant 0 : index
    %c0_4 = arith.constant 0 : index
    %c0_5 = arith.constant 0 : index
    %c0_6 = arith.constant 0 : index
    %2 = vector.load %arg2[%c0_3, %c0_4, %c0_5, %c0_6] : memref<1x4x4x256xf32, #tpu.memory_space<vmem>>, vector<1x1x4x256xf32>
    %3 = vector.shape_cast %2 : vector<1x1x4x256xf32> to vector<4x256xf32>
    %cst = arith.constant dense<0.000000e+00> : vector<4x128xf32>
    %4 = tpu.matmul %3, %0, %cst {dimension_numbers = #tpu.dot_dimension_numbers<[1], [0], [0], [1], [0, 0, 1, 1], [], []>} : vector<4x256xf32>, vector<256x128xf32>, vector<4x128xf32> -> vector<4x128xf32>
    %5 = vector.broadcast %1 : vector<1x128xf32> to vector<4x128xf32>
    %6 = arith.addf %4, %5 : vector<4x128xf32>
    %c0_7 = arith.constant 0 : index
    %c1 = arith.constant 1 : index
    %c0_8 = arith.constant 0 : index
    %c0_9 = arith.constant 0 : index
    %7 = vector.load %arg2[%c0_7, %c1, %c0_8, %c0_9] : memref<1x4x4x256xf32, #tpu.memory_space<vmem>>, vector<1x1x4x256xf32>
    %8 = vector.shape_cast %7 : vector<1x1x4x256xf32> to vector<4x256xf32>
    %cst_10 = arith.constant dense<0.000000e+00> : vector<4x128xf32>
    %9 = tpu.matmul %8, %0, %cst_10 {dimension_numbers = #tpu.dot_dimension_numbers<[1], [0], [0], [1], [0, 0, 1, 1], [], []>} : vector<4x256xf32>, vector<256x128xf32>, vector<4x128xf32> -> vector<4x128xf32>
    %10 = vector.broadcast %1 : vector<1x128xf32> to vector<4x128xf32>
    %11 = arith.addf %9, %10 : vector<4x128xf32>
    %c0_11 = arith.constant 0 : index
    %c2 = arith.constant 2 : index
    %c0_12 = arith.constant 0 : index
    %c0_13 = arith.constant 0 : index
    %12 = vector.load %arg2[%c0_11, %c2, %c0_12, %c0_13] : memref<1x4x4x256xf32, #tpu.memory_space<vmem>>, vector<1x1x4x256xf32>
    %13 = vector.shape_cast %12 : vector<1x1x4x256xf32> to vector<4x256xf32>
    %cst_14 = arith.constant dense<0.000000e+00> : vector<4x128xf32>
    %14 = tpu.matmul %13, %0, %cst_14 {dimension_numbers = #tpu.dot_dimension_numbers<[1], [0], [0], [1], [0, 0, 1, 1], [], []>} : vector<4x256xf32>, vector<256x128xf32>, vector<4x128xf32> -> vector<4x128xf32>
    %15 = vector.broadcast %1 : vector<1x128xf32> to vector<4x128xf32>
    %16 = arith.addf %14, %15 : vector<4x128xf32>
    %c0_15 = arith.constant 0 : index
    %c3 = arith.constant 3 : index
    %c0_16 = arith.constant 0 : index
    %c0_17 = arith.constant 0 : index
    %17 = vector.load %arg2[%c0_15, %c3, %c0_16, %c0_17] : memref<1x4x4x256xf32, #tpu.memory_space<vmem>>, vector<1x1x4x256xf32>
    %18 = vector.shape_cast %17 : vector<1x1x4x256xf32> to vector<4x256xf32>
    %cst_18 = arith.constant dense<0.000000e+00> : vector<4x128xf32>
    %19 = tpu.matmul %18, %0, %cst_18 {dimension_numbers = #tpu.dot_dimension_numbers<[1], [0], [0], [1], [0, 0, 1, 1], [], []>} : vector<4x256xf32>, vector<256x128xf32>, vector<4x128xf32> -> vector<4x128xf32>
    %20 = vector.broadcast %1 : vector<1x128xf32> to vector<4x128xf32>
    %21 = arith.addf %19, %20 : vector<4x128xf32>
    %22 = arith.maximumf %6, %11 : vector<4x128xf32>
    %23 = arith.maximumf %16, %21 : vector<4x128xf32>
    %24 = arith.maximumf %22, %23 : vector<4x128xf32>
    %25 = vector.extract_strided_slice %24 {offsets = [0, 0], sizes = [4, 32], strides = [1, 1]} : vector<4x128xf32> to vector<4x32xf32>
    %26 = vector.extract_strided_slice %24 {offsets = [0, 32], sizes = [4, 32], strides = [1, 1]} : vector<4x128xf32> to vector<4x32xf32>
    %27 = arith.maximumf %25, %26 : vector<4x32xf32>
    %28 = vector.extract_strided_slice %24 {offsets = [0, 64], sizes = [4, 32], strides = [1, 1]} : vector<4x128xf32> to vector<4x32xf32>
    %29 = vector.extract_strided_slice %24 {offsets = [0, 96], sizes = [4, 32], strides = [1, 1]} : vector<4x128xf32> to vector<4x32xf32>
    %30 = arith.maximumf %28, %29 : vector<4x32xf32>
    %31 = arith.maximumf %27, %30 : vector<4x32xf32>
    %c0_19 = arith.constant 0 : index
    %c0_20 = arith.constant 0 : index
    %c0_21 = arith.constant 0 : index
    %c0_22 = arith.constant 0 : index
    %32 = vector.load %arg6[%c0_19, %c0_20, %c0_21, %c0_22] : memref<1x1x4x32xf32, #tpu.memory_space<vmem>>, vector<1x1x4x32xf32>
    %33 = vector.shape_cast %32 : vector<1x1x4x32xf32> to vector<4x32xf32>
    %34 = vector.shape_cast %31 : vector<4x32xf32> to vector<1x1x4x32xf32>
    tpu.vector_store %arg6[%c0_19, %c0_20, %c0_21, %c0_22], %34 {strides = array<i32>} : memref<1x1x4x32xf32, #tpu.memory_space<vmem>>, vector<1x1x4x32xf32>,
    %c0_23 = arith.constant 0 : index
    %c0_24 = arith.constant 0 : index
    %c0_25 = arith.constant 0 : index
    %c0_26 = arith.constant 0 : index
    %35 = vector.load %arg3[%c0_23, %c0_24, %c0_25, %c0_26] : memref<1x4x4x128xf32, #tpu.memory_space<vmem>>, vector<1x1x4x128xf32>
    %36 = vector.shape_cast %35 : vector<1x1x4x128xf32> to vector<4x128xf32>
    %c0_27 = arith.constant 0 : index
    %c1_28 = arith.constant 1 : index
    %c0_29 = arith.constant 0 : index
    %c0_30 = arith.constant 0 : index
    %37 = vector.load %arg3[%c0_27, %c1_28, %c0_29, %c0_30] : memref<1x4x4x128xf32, #tpu.memory_space<vmem>>, vector<1x1x4x128xf32>
    %38 = vector.shape_cast %37 : vector<1x1x4x128xf32> to vector<4x128xf32>
    %39 = arith.maximumf %36, %38 : vector<4x128xf32>
    %c0_31 = arith.constant 0 : index
    %c2_32 = arith.constant 2 : index
    %c0_33 = arith.constant 0 : index
    %c0_34 = arith.constant 0 : index
    %40 = vector.load %arg3[%c0_31, %c2_32, %c0_33, %c0_34] : memref<1x4x4x128xf32, #tpu.memory_space<vmem>>, vector<1x1x4x128xf32>
    %41 = vector.shape_cast %40 : vector<1x1x4x128xf32> to vector<4x128xf32>
    %c0_35 = arith.constant 0 : index
    %c3_36 = arith.constant 3 : index
    %c0_37 = arith.constant 0 : index
    %c0_38 = arith.constant 0 : index
    %42 = vector.load %arg3[%c0_35, %c3_36, %c0_37, %c0_38] : memref<1x4x4x128xf32, #tpu.memory_space<vmem>>, vector<1x1x4x128xf32>
    %43 = vector.shape_cast %42 : vector<1x1x4x128xf32> to vector<4x128xf32>
    %44 = arith.maximumf %41, %43 : vector<4x128xf32>
    %45 = arith.maximumf %39, %44 : vector<4x128xf32>
    %46 = vector.extract_strided_slice %45 {offsets = [0, 0], sizes = [4, 32], strides = [1, 1]} : vector<4x128xf32> to vector<4x32xf32>
    %47 = vector.extract_strided_slice %45 {offsets = [0, 32], sizes = [4, 32], strides = [1, 1]} : vector<4x128xf32> to vector<4x32xf32>
    %48 = arith.maximumf %46, %47 : vector<4x32xf32>
    %49 = vector.extract_strided_slice %45 {offsets = [0, 64], sizes = [4, 32], strides = [1, 1]} : vector<4x128xf32> to vector<4x32xf32>
    %50 = vector.extract_strided_slice %45 {offsets = [0, 96], sizes = [4, 32], strides = [1, 1]} : vector<4x128xf32> to vector<4x32xf32>
    %51 = arith.maximumf %49, %50 : vector<4x32xf32>
    %52 = arith.maximumf %48, %51 : vector<4x32xf32>
    %c0_39 = arith.constant 0 : index
    %c0_40 = arith.constant 0 : index
    %c0_41 = arith.constant 0 : index
    %c0_42 = arith.constant 0 : index
    %53 = vector.load %arg7[%c0_39, %c0_40, %c0_41, %c0_42] : memref<1x1x4x32xf32, #tpu.memory_space<vmem>>, vector<1x1x4x32xf32>
    %54 = vector.shape_cast %53 : vector<1x1x4x32xf32> to vector<4x32xf32>
    %55 = vector.shape_cast %52 : vector<4x32xf32> to vector<1x1x4x32xf32>
    tpu.vector_store %arg7[%c0_39, %c0_40, %c0_41, %c0_42], %55 {strides = array<i32>} : memref<1x1x4x32xf32, #tpu.memory_space<vmem>>, vector<1x1x4x32xf32>,
    return
  }
  func.func @transform_0(%arg0: i32, %arg1: i32) -> (i32, i32, i32, i32) {
    %c0_i32 = arith.constant 0 : i32
    %c0_i32_0 = arith.constant 0 : i32
    %c0_i32_1 = arith.constant 0 : i32
    return %arg0, %arg1, %c0_i32, %c0_i32_0 : i32, i32, i32, i32
  }
  func.func @transform_1(%arg0: i32, %arg1: i32) -> (i32, i32, i32, i32) {
    %c0_i32 = arith.constant 0 : i32
    %c0_i32_0 = arith.constant 0 : i32
    %c0_i32_1 = arith.constant 0 : i32
    return %arg0, %arg1, %c0_i32, %c0_i32_0 : i32, i32, i32, i32
  }
  func.func @transform_2(%arg0: i32, %arg1: i32) -> (i32, i32) {
    %c0_i32 = arith.constant 0 : i32
    %c0_i32_0 = arith.constant 0 : i32
    %c0_i32_1 = arith.constant 0 : i32
    return %c0_i32, %c0_i32_0 : i32, i32
  }
  func.func @transform_3(%arg0: i32, %arg1: i32) -> (i32, i32) {
    %c0_i32 = arith.constant 0 : i32
    %c0_i32_0 = arith.constant 0 : i32
    %c0_i32_1 = arith.constant 0 : i32
    return %c0_i32, %c0_i32_0 : i32, i32
  }
  func.func @transform_4(%arg0: i32, %arg1: i32) -> (i32, i32, i32, i32) {
    %c0_i32 = arith.constant 0 : i32
    %c0_i32_0 = arith.constant 0 : i32
    %c0_i32_1 = arith.constant 0 : i32
    return %arg0, %arg1, %c0_i32, %c0_i32_0 : i32, i32, i32, i32
  }
  func.func @transform_5(%arg0: i32, %arg1: i32) -> (i32, i32, i32, i32) {
    %c0_i32 = arith.constant 0 : i32
    %c0_i32_0 = arith.constant 0 : i32
    %c0_i32_1 = arith.constant 0 : i32
    return %arg0, %arg1, %c0_i32, %c0_i32_0 : i32, i32, i32, i32
  }
}

module attributes {stable_mosaic.version = 11 : i64} {
  func.func @_attention_kernel(%arg0: i32, %arg1: i32, %arg2: memref<1x16x32xf32, #tpu.memory_space<vmem>>, %arg3: memref<1x16x32xf32, #tpu.memory_space<vmem>>, %arg4: memref<1x16x32xf32, #tpu.memory_space<vmem>>) attributes {dimension_semantics = [#tpu.dimension_semantics<parallel>, #tpu.dimension_semantics<parallel>], iteration_bounds = array<i64: 2, 1>, scalar_prefetch = 0 : i64, scratch_operands = 0 : i64, tpu.core_type = #tpu.core_type<tc>, window_params = [{transform_indices = @transform_0, window_bounds = array<i64: 1, 16, 32>}, {transform_indices = @transform_1, window_bounds = array<i64: 1, 16, 32>}, {transform_indices = @transform_2, window_bounds = array<i64: 1, 16, 32>}]} {
    %c0 = arith.constant 0 : index
    %c0_0 = arith.constant 0 : index
    %c0_1 = arith.constant 0 : index
    %0 = vector.load %arg2[%c0, %c0_0, %c0_1] : memref<1x16x32xf32, #tpu.memory_space<vmem>>, vector<1x16x32xf32>
    %1 = vector.shape_cast %0 : vector<1x16x32xf32> to vector<16x32xf32>
    %c0_2 = arith.constant 0 : index
    %c0_3 = arith.constant 0 : index
    %c0_4 = arith.constant 0 : index
    %2 = vector.load %arg3[%c0_2, %c0_3, %c0_4] : memref<1x16x32xf32, #tpu.memory_space<vmem>>, vector<1x16x32xf32>
    %3 = vector.shape_cast %2 : vector<1x16x32xf32> to vector<16x32xf32>
    %cst = arith.constant dense<0.000000e+00> : vector<16x16xf32>
    %4 = tpu.matmul %1, %3, %cst {dimension_numbers = #tpu.dot_dimension_numbers<[1], [1], [0], [0], [0, 0, 1, 0], [], []>} : vector<16x32xf32>, vector<16x32xf32>, vector<16x16xf32> -> vector<16x16xf32>
    %cst_5 = arith.constant dense<0xFF800000> : vector<16xf32>
    %5 = vector.multi_reduction <maximumf>, %4, %cst_5 [1] : vector<16x16xf32> to vector<16xf32>
    %6 = vector.shape_cast %5 : vector<16xf32> to vector<16x1xf32>
    %7 = vector.broadcast %6 : vector<16x1xf32> to vector<16x16xf32>
    %8 = arith.subf %4, %7 : vector<16x16xf32>
    %9 = math.exp %8 : vector<16x16xf32>
    %cst_6 = arith.constant dense<0.000000e+00> : vector<16xf32>
    %10 = vector.multi_reduction <add>, %9, %cst_6 [1] : vector<16x16xf32> to vector<16xf32>
    %11 = vector.shape_cast %10 : vector<16xf32> to vector<16x1xf32>
    %12 = tpu.reciprocal %11 {approx = true} : vector<16x1xf32> -> vector<16x1xf32>
    %13 = vector.broadcast %12 : vector<16x1xf32> to vector<16x16xf32>
    %14 = arith.mulf %9, %13 : vector<16x16xf32>
    %cst_7 = arith.constant dense<0.000000e+00> : vector<16x32xf32>
    %15 = tpu.matmul %14, %3, %cst_7 {dimension_numbers = #tpu.dot_dimension_numbers<[1], [0], [0], [1], [0, 0, 1, 1], [], []>} : vector<16x16xf32>, vector<16x32xf32>, vector<16x32xf32> -> vector<16x32xf32>
    %c0_8 = arith.constant 0 : index
    %c0_9 = arith.constant 0 : index
    %c0_10 = arith.constant 0 : index
    %16 = vector.load %arg4[%c0_8, %c0_9, %c0_10] : memref<1x16x32xf32, #tpu.memory_space<vmem>>, vector<1x16x32xf32>
    %17 = vector.shape_cast %16 : vector<1x16x32xf32> to vector<16x32xf32>
    %18 = vector.shape_cast %15 : vector<16x32xf32> to vector<1x16x32xf32>
    tpu.vector_store %arg4[%c0_8, %c0_9, %c0_10], %18 {strides = array<i32>} : memref<1x16x32xf32, #tpu.memory_space<vmem>>, vector<1x16x32xf32>,
    return
  }
  func.func @transform_0(%arg0: i32, %arg1: i32) -> (i32, i32, i32) {
    %c0_i32 = arith.constant 0 : i32
    %c0_i32_0 = arith.constant 0 : i32
    return %arg0, %arg1, %c0_i32 : i32, i32, i32
  }
  func.func @transform_1(%arg0: i32, %arg1: i32) -> (i32, i32, i32) {
    %c0_i32 = arith.constant 0 : i32
    %c0_i32_0 = arith.constant 0 : i32
    %c0_i32_1 = arith.constant 0 : i32
    return %arg0, %c0_i32, %c0_i32_0 : i32, i32, i32
  }
  func.func @transform_2(%arg0: i32, %arg1: i32) -> (i32, i32, i32) {
    %c0_i32 = arith.constant 0 : i32
    %c0_i32_0 = arith.constant 0 : i32
    return %arg0, %arg1, %c0_i32 : i32, i32, i32
  }
}

module attributes {stable_mosaic.version = 11 : i64} {
  func.func @_fused_output_kernel(%arg0: i32, %arg1: i32, %arg2: memref<1x4x4x128xf32, #tpu.memory_space<vmem>>, %arg3: memref<1x4x4x256xf32, #tpu.memory_space<vmem>>, %arg4: memref<1x1x4x32xf32, #tpu.memory_space<vmem>>, %arg5: memref<128x256xf32, #tpu.memory_space<vmem>>, %arg6: memref<256x256xf32, #tpu.memory_space<vmem>>, %arg7: memref<4x32x256xf32, #tpu.memory_space<vmem>>, %arg8: memref<1x256xf32, #tpu.memory_space<vmem>>, %arg9: memref<1x4x4x256xf32, #tpu.memory_space<vmem>>) attributes {dimension_semantics = [#tpu.dimension_semantics<parallel>, #tpu.dimension_semantics<parallel>], iteration_bounds = array<i64: 2, 4>, scalar_prefetch = 0 : i64, scratch_operands = 0 : i64, tpu.core_type = #tpu.core_type<tc>, window_params = [{transform_indices = @transform_0, window_bounds = array<i64: 1, 4, 4, 128>}, {transform_indices = @transform_1, window_bounds = array<i64: 1, 4, 4, 256>}, {transform_indices = @transform_2, window_bounds = array<i64: 1, 1, 4, 32>}, {pipeline_mode = #tpu.pipeline_mode<synchronous>, transform_indices = @transform_3, window_bounds = array<i64: 128, 256>}, {pipeline_mode = #tpu.pipeline_mode<synchronous>, transform_indices = @transform_4, window_bounds = array<i64: 256, 256>}, {pipeline_mode = #tpu.pipeline_mode<synchronous>, transform_indices = @transform_5, window_bounds = array<i64: 4, 32, 256>}, {pipeline_mode = #tpu.pipeline_mode<synchronous>, transform_indices = @transform_6, window_bounds = array<i64: 1, 256>}, {transform_indices = @transform_7, window_bounds = array<i64: 1, 4, 4, 256>}]} {
    %c0 = arith.constant 0 : index
    %c0_0 = arith.constant 0 : index
    %0 = vector.load %arg5[%c0, %c0_0] : memref<128x256xf32, #tpu.memory_space<vmem>>, vector<128x256xf32>
    %c0_1 = arith.constant 0 : index
    %c0_2 = arith.constant 0 : index
    %1 = vector.load %arg6[%c0_1, %c0_2] : memref<256x256xf32, #tpu.memory_space<vmem>>, vector<256x256xf32>
    %c0_3 = arith.constant 0 : index
    %c0_4 = arith.constant 0 : index
    %2 = vector.load %arg8[%c0_3, %c0_4] : memref<1x256xf32, #tpu.memory_space<vmem>>, vector<1x256xf32>
    %c0_5 = arith.constant 0 : index
    %c0_6 = arith.constant 0 : index
    %c0_7 = arith.constant 0 : index
    %c0_8 = arith.constant 0 : index
    %3 = vector.load %arg4[%c0_5, %c0_6, %c0_7, %c0_8] : memref<1x1x4x32xf32, #tpu.memory_space<vmem>>, vector<1x1x4x32xf32>
    %4 = vector.shape_cast %3 : vector<1x1x4x32xf32> to vector<4x32xf32>
    %c0_9 = arith.constant 0 : index
    %c0_10 = arith.constant 0 : index
    %c0_11 = arith.constant 0 : index
    %c0_12 = arith.constant 0 : index
    %5 = vector.load %arg2[%c0_9, %c0_10, %c0_11, %c0_12] : memref<1x4x4x128xf32, #tpu.memory_space<vmem>>, vector<1x1x4x128xf32>
    %6 = vector.shape_cast %5 : vector<1x1x4x128xf32> to vector<4x128xf32>
    %cst = arith.constant dense<0.000000e+00> : vector<4x256xf32>
    %7 = tpu.matmul %6, %0, %cst {dimension_numbers = #tpu.dot_dimension_numbers<[1], [0], [0], [1], [0, 0, 1, 1], [], []>} : vector<4x128xf32>, vector<128x256xf32>, vector<4x256xf32> -> vector<4x256xf32>
    %c0_13 = arith.constant 0 : index
    %c0_14 = arith.constant 0 : index
    %c0_15 = arith.constant 0 : index
    %c0_16 = arith.constant 0 : index
    %8 = vector.load %arg3[%c0_13, %c0_14, %c0_15, %c0_16] : memref<1x4x4x256xf32, #tpu.memory_space<vmem>>, vector<1x1x4x256xf32>
    %9 = vector.shape_cast %8 : vector<1x1x4x256xf32> to vector<4x256xf32>
    %cst_17 = arith.constant dense<0.000000e+00> : vector<4x256xf32>
    %10 = tpu.matmul %9, %1, %cst_17 {dimension_numbers = #tpu.dot_dimension_numbers<[1], [0], [0], [1], [0, 0, 1, 1], [], []>} : vector<4x256xf32>, vector<256x256xf32>, vector<4x256xf32> -> vector<4x256xf32>
    %11 = arith.addf %7, %10 : vector<4x256xf32>
    %c0_18 = arith.constant 0 : index
    %c0_19 = arith.constant 0 : index
    %c0_20 = arith.constant 0 : index
    %12 = vector.load %arg7[%c0_18, %c0_19, %c0_20] : memref<4x32x256xf32, #tpu.memory_space<vmem>>, vector<1x32x256xf32>
    %13 = vector.shape_cast %12 : vector<1x32x256xf32> to vector<32x256xf32>
    %cst_21 = arith.constant dense<0.000000e+00> : vector<4x256xf32>
    %14 = tpu.matmul %4, %13, %cst_21 {dimension_numbers = #tpu.dot_dimension_numbers<[1], [0], [0], [1], [0, 0, 1, 1], [], []>} : vector<4x32xf32>, vector<32x256xf32>, vector<4x256xf32> -> vector<4x256xf32>
    %15 = arith.addf %11, %14 : vector<4x256xf32>
    %16 = vector.broadcast %2 : vector<1x256xf32> to vector<4x256xf32>
    %17 = arith.addf %15, %16 : vector<4x256xf32>
    %c0_22 = arith.constant 0 : index
    %c0_23 = arith.constant 0 : index
    %c0_24 = arith.constant 0 : index
    %c0_25 = arith.constant 0 : index
    %18 = vector.load %arg9[%c0_22, %c0_23, %c0_24, %c0_25] : memref<1x4x4x256xf32, #tpu.memory_space<vmem>>, vector<1x1x4x256xf32>
    %19 = vector.shape_cast %18 : vector<1x1x4x256xf32> to vector<4x256xf32>
    %20 = vector.shape_cast %17 : vector<4x256xf32> to vector<1x1x4x256xf32>
    tpu.vector_store %arg9[%c0_22, %c0_23, %c0_24, %c0_25], %20 {strides = array<i32>} : memref<1x4x4x256xf32, #tpu.memory_space<vmem>>, vector<1x1x4x256xf32>,
    %c0_26 = arith.constant 0 : index
    %c1 = arith.constant 1 : index
    %c0_27 = arith.constant 0 : index
    %c0_28 = arith.constant 0 : index
    %21 = vector.load %arg2[%c0_26, %c1, %c0_27, %c0_28] : memref<1x4x4x128xf32, #tpu.memory_space<vmem>>, vector<1x1x4x128xf32>
    %22 = vector.shape_cast %21 : vector<1x1x4x128xf32> to vector<4x128xf32>
    %cst_29 = arith.constant dense<0.000000e+00> : vector<4x256xf32>
    %23 = tpu.matmul %22, %0, %cst_29 {dimension_numbers = #tpu.dot_dimension_numbers<[1], [0], [0], [1], [0, 0, 1, 1], [], []>} : vector<4x128xf32>, vector<128x256xf32>, vector<4x256xf32> -> vector<4x256xf32>
    %c0_30 = arith.constant 0 : index
    %c1_31 = arith.constant 1 : index
    %c0_32 = arith.constant 0 : index
    %c0_33 = arith.constant 0 : index
    %24 = vector.load %arg3[%c0_30, %c1_31, %c0_32, %c0_33] : memref<1x4x4x256xf32, #tpu.memory_space<vmem>>, vector<1x1x4x256xf32>
    %25 = vector.shape_cast %24 : vector<1x1x4x256xf32> to vector<4x256xf32>
    %cst_34 = arith.constant dense<0.000000e+00> : vector<4x256xf32>
    %26 = tpu.matmul %25, %1, %cst_34 {dimension_numbers = #tpu.dot_dimension_numbers<[1], [0], [0], [1], [0, 0, 1, 1], [], []>} : vector<4x256xf32>, vector<256x256xf32>, vector<4x256xf32> -> vector<4x256xf32>
    %27 = arith.addf %23, %26 : vector<4x256xf32>
    %c1_35 = arith.constant 1 : index
    %c0_36 = arith.constant 0 : index
    %c0_37 = arith.constant 0 : index
    %28 = vector.load %arg7[%c1_35, %c0_36, %c0_37] : memref<4x32x256xf32, #tpu.memory_space<vmem>>, vector<1x32x256xf32>
    %29 = vector.shape_cast %28 : vector<1x32x256xf32> to vector<32x256xf32>
    %cst_38 = arith.constant dense<0.000000e+00> : vector<4x256xf32>
    %30 = tpu.matmul %4, %29, %cst_38 {dimension_numbers = #tpu.dot_dimension_numbers<[1], [0], [0], [1], [0, 0, 1, 1], [], []>} : vector<4x32xf32>, vector<32x256xf32>, vector<4x256xf32> -> vector<4x256xf32>
    %31 = arith.addf %27, %30 : vector<4x256xf32>
    %32 = vector.broadcast %2 : vector<1x256xf32> to vector<4x256xf32>
    %33 = arith.addf %31, %32 : vector<4x256xf32>
    %c0_39 = arith.constant 0 : index
    %c1_40 = arith.constant 1 : index
    %c0_41 = arith.constant 0 : index
    %c0_42 = arith.constant 0 : index
    %34 = vector.load %arg9[%c0_39, %c1_40, %c0_41, %c0_42] : memref<1x4x4x256xf32, #tpu.memory_space<vmem>>, vector<1x1x4x256xf32>
    %35 = vector.shape_cast %34 : vector<1x1x4x256xf32> to vector<4x256xf32>
    %36 = vector.shape_cast %33 : vector<4x256xf32> to vector<1x1x4x256xf32>
    tpu.vector_store %arg9[%c0_39, %c1_40, %c0_41, %c0_42], %36 {strides = array<i32>} : memref<1x4x4x256xf32, #tpu.memory_space<vmem>>, vector<1x1x4x256xf32>,
    %c0_43 = arith.constant 0 : index
    %c2 = arith.constant 2 : index
    %c0_44 = arith.constant 0 : index
    %c0_45 = arith.constant 0 : index
    %37 = vector.load %arg2[%c0_43, %c2, %c0_44, %c0_45] : memref<1x4x4x128xf32, #tpu.memory_space<vmem>>, vector<1x1x4x128xf32>
    %38 = vector.shape_cast %37 : vector<1x1x4x128xf32> to vector<4x128xf32>
    %cst_46 = arith.constant dense<0.000000e+00> : vector<4x256xf32>
    %39 = tpu.matmul %38, %0, %cst_46 {dimension_numbers = #tpu.dot_dimension_numbers<[1], [0], [0], [1], [0, 0, 1, 1], [], []>} : vector<4x128xf32>, vector<128x256xf32>, vector<4x256xf32> -> vector<4x256xf32>
    %c0_47 = arith.constant 0 : index
    %c2_48 = arith.constant 2 : index
    %c0_49 = arith.constant 0 : index
    %c0_50 = arith.constant 0 : index
    %40 = vector.load %arg3[%c0_47, %c2_48, %c0_49, %c0_50] : memref<1x4x4x256xf32, #tpu.memory_space<vmem>>, vector<1x1x4x256xf32>
    %41 = vector.shape_cast %40 : vector<1x1x4x256xf32> to vector<4x256xf32>
    %cst_51 = arith.constant dense<0.000000e+00> : vector<4x256xf32>
    %42 = tpu.matmul %41, %1, %cst_51 {dimension_numbers = #tpu.dot_dimension_numbers<[1], [0], [0], [1], [0, 0, 1, 1], [], []>} : vector<4x256xf32>, vector<256x256xf32>, vector<4x256xf32> -> vector<4x256xf32>
    %43 = arith.addf %39, %42 : vector<4x256xf32>
    %c2_52 = arith.constant 2 : index
    %c0_53 = arith.constant 0 : index
    %c0_54 = arith.constant 0 : index
    %44 = vector.load %arg7[%c2_52, %c0_53, %c0_54] : memref<4x32x256xf32, #tpu.memory_space<vmem>>, vector<1x32x256xf32>
    %45 = vector.shape_cast %44 : vector<1x32x256xf32> to vector<32x256xf32>
    %cst_55 = arith.constant dense<0.000000e+00> : vector<4x256xf32>
    %46 = tpu.matmul %4, %45, %cst_55 {dimension_numbers = #tpu.dot_dimension_numbers<[1], [0], [0], [1], [0, 0, 1, 1], [], []>} : vector<4x32xf32>, vector<32x256xf32>, vector<4x256xf32> -> vector<4x256xf32>
    %47 = arith.addf %43, %46 : vector<4x256xf32>
    %48 = vector.broadcast %2 : vector<1x256xf32> to vector<4x256xf32>
    %49 = arith.addf %47, %48 : vector<4x256xf32>
    %c0_56 = arith.constant 0 : index
    %c2_57 = arith.constant 2 : index
    %c0_58 = arith.constant 0 : index
    %c0_59 = arith.constant 0 : index
    %50 = vector.load %arg9[%c0_56, %c2_57, %c0_58, %c0_59] : memref<1x4x4x256xf32, #tpu.memory_space<vmem>>, vector<1x1x4x256xf32>
    %51 = vector.shape_cast %50 : vector<1x1x4x256xf32> to vector<4x256xf32>
    %52 = vector.shape_cast %49 : vector<4x256xf32> to vector<1x1x4x256xf32>
    tpu.vector_store %arg9[%c0_56, %c2_57, %c0_58, %c0_59], %52 {strides = array<i32>} : memref<1x4x4x256xf32, #tpu.memory_space<vmem>>, vector<1x1x4x256xf32>,
    %c0_60 = arith.constant 0 : index
    %c3 = arith.constant 3 : index
    %c0_61 = arith.constant 0 : index
    %c0_62 = arith.constant 0 : index
    %53 = vector.load %arg2[%c0_60, %c3, %c0_61, %c0_62] : memref<1x4x4x128xf32, #tpu.memory_space<vmem>>, vector<1x1x4x128xf32>
    %54 = vector.shape_cast %53 : vector<1x1x4x128xf32> to vector<4x128xf32>
    %cst_63 = arith.constant dense<0.000000e+00> : vector<4x256xf32>
    %55 = tpu.matmul %54, %0, %cst_63 {dimension_numbers = #tpu.dot_dimension_numbers<[1], [0], [0], [1], [0, 0, 1, 1], [], []>} : vector<4x128xf32>, vector<128x256xf32>, vector<4x256xf32> -> vector<4x256xf32>
    %c0_64 = arith.constant 0 : index
    %c3_65 = arith.constant 3 : index
    %c0_66 = arith.constant 0 : index
    %c0_67 = arith.constant 0 : index
    %56 = vector.load %arg3[%c0_64, %c3_65, %c0_66, %c0_67] : memref<1x4x4x256xf32, #tpu.memory_space<vmem>>, vector<1x1x4x256xf32>
    %57 = vector.shape_cast %56 : vector<1x1x4x256xf32> to vector<4x256xf32>
    %cst_68 = arith.constant dense<0.000000e+00> : vector<4x256xf32>
    %58 = tpu.matmul %57, %1, %cst_68 {dimension_numbers = #tpu.dot_dimension_numbers<[1], [0], [0], [1], [0, 0, 1, 1], [], []>} : vector<4x256xf32>, vector<256x256xf32>, vector<4x256xf32> -> vector<4x256xf32>
    %59 = arith.addf %55, %58 : vector<4x256xf32>
    %c3_69 = arith.constant 3 : index
    %c0_70 = arith.constant 0 : index
    %c0_71 = arith.constant 0 : index
    %60 = vector.load %arg7[%c3_69, %c0_70, %c0_71] : memref<4x32x256xf32, #tpu.memory_space<vmem>>, vector<1x32x256xf32>
    %61 = vector.shape_cast %60 : vector<1x32x256xf32> to vector<32x256xf32>
    %cst_72 = arith.constant dense<0.000000e+00> : vector<4x256xf32>
    %62 = tpu.matmul %4, %61, %cst_72 {dimension_numbers = #tpu.dot_dimension_numbers<[1], [0], [0], [1], [0, 0, 1, 1], [], []>} : vector<4x32xf32>, vector<32x256xf32>, vector<4x256xf32> -> vector<4x256xf32>
    %63 = arith.addf %59, %62 : vector<4x256xf32>
    %64 = vector.broadcast %2 : vector<1x256xf32> to vector<4x256xf32>
    %65 = arith.addf %63, %64 : vector<4x256xf32>
    %c0_73 = arith.constant 0 : index
    %c3_74 = arith.constant 3 : index
    %c0_75 = arith.constant 0 : index
    %c0_76 = arith.constant 0 : index
    %66 = vector.load %arg9[%c0_73, %c3_74, %c0_75, %c0_76] : memref<1x4x4x256xf32, #tpu.memory_space<vmem>>, vector<1x1x4x256xf32>
    %67 = vector.shape_cast %66 : vector<1x1x4x256xf32> to vector<4x256xf32>
    %68 = vector.shape_cast %65 : vector<4x256xf32> to vector<1x1x4x256xf32>
    tpu.vector_store %arg9[%c0_73, %c3_74, %c0_75, %c0_76], %68 {strides = array<i32>} : memref<1x4x4x256xf32, #tpu.memory_space<vmem>>, vector<1x1x4x256xf32>,
    return
  }
  func.func @transform_0(%arg0: i32, %arg1: i32) -> (i32, i32, i32, i32) {
    %c0_i32 = arith.constant 0 : i32
    %c0_i32_0 = arith.constant 0 : i32
    %c0_i32_1 = arith.constant 0 : i32
    return %arg0, %arg1, %c0_i32, %c0_i32_0 : i32, i32, i32, i32
  }
  func.func @transform_1(%arg0: i32, %arg1: i32) -> (i32, i32, i32, i32) {
    %c0_i32 = arith.constant 0 : i32
    %c0_i32_0 = arith.constant 0 : i32
    %c0_i32_1 = arith.constant 0 : i32
    return %arg0, %arg1, %c0_i32, %c0_i32_0 : i32, i32, i32, i32
  }
  func.func @transform_2(%arg0: i32, %arg1: i32) -> (i32, i32, i32, i32) {
    %c0_i32 = arith.constant 0 : i32
    %c0_i32_0 = arith.constant 0 : i32
    %c0_i32_1 = arith.constant 0 : i32
    return %arg0, %arg1, %c0_i32, %c0_i32_0 : i32, i32, i32, i32
  }
  func.func @transform_3(%arg0: i32, %arg1: i32) -> (i32, i32) {
    %c0_i32 = arith.constant 0 : i32
    %c0_i32_0 = arith.constant 0 : i32
    %c0_i32_1 = arith.constant 0 : i32
    return %c0_i32, %c0_i32_0 : i32, i32
  }
  func.func @transform_4(%arg0: i32, %arg1: i32) -> (i32, i32) {
    %c0_i32 = arith.constant 0 : i32
    %c0_i32_0 = arith.constant 0 : i32
    %c0_i32_1 = arith.constant 0 : i32
    return %c0_i32, %c0_i32_0 : i32, i32
  }
  func.func @transform_5(%arg0: i32, %arg1: i32) -> (i32, i32, i32) {
    %c0_i32 = arith.constant 0 : i32
    %c0_i32_0 = arith.constant 0 : i32
    %c0_i32_1 = arith.constant 0 : i32
    %c0_i32_2 = arith.constant 0 : i32
    return %c0_i32, %c0_i32_0, %c0_i32_1 : i32, i32, i32
  }
  func.func @transform_6(%arg0: i32, %arg1: i32) -> (i32, i32) {
    %c0_i32 = arith.constant 0 : i32
    %c0_i32_0 = arith.constant 0 : i32
    %c0_i32_1 = arith.constant 0 : i32
    return %c0_i32, %c0_i32_0 : i32, i32
  }
  func.func @transform_7(%arg0: i32, %arg1: i32) -> (i32, i32, i32, i32) {
    %c0_i32 = arith.constant 0 : i32
    %c0_i32_0 = arith.constant 0 : i32
    %c0_i32_1 = arith.constant 0 : i32
    return %arg0, %arg1, %c0_i32, %c0_i32_0 : i32, i32, i32, i32
  }
}

</mosaic_0001>

<bundles_post_ra>
// kernel: tile.13
= control target key start
LH: loop header
LB: loop body
LE: loop exit
PB: predicated region body
PF: predicated region fallthrough
CT: control target
= control target key end

     0   :  { %s22_s0 = inlined_call_operand.vmem [shape: f32[32], index: 0, kind: input, shape index: {}]   ;;  %s23_s1 = inlined_call_operand.vmem [shape: f32[4,32], index: 1, kind: output, shape index: {}]  }
   0x1   :  { %v4_v0 = vld [vmem:[%s22_s0] ss:$0 sm:$0xff] }
   0x2   :  { %5 = vst [vmem:[%s23_s1] sm:$0xf] %v4_v0 }

// kernel: tile.14
= control target key start
LH: loop header
LB: loop body
LE: loop exit
PB: predicated region body
PF: predicated region fallthrough
CT: control target
= control target key end

     0   :  { %vm7_vm0 = vcmask 261120   ;;  %s37_s8 = smov 32   ;;  %s38_s9 = smov 64   ;;  %vm13_vm1 = vcmask 1048320   ;;  %vm19_vm2 = vcmask 785920   ;;  %vm25_vm3 = vcmask 523520   ;;  %s55_s0 = inlined_call_operand.vmem [shape: f32[4,32], index: 0, kind: input, shape index: {}]   ;;  %s56_s1 = inlined_call_operand.vmem [shape: f32[1,128], index: 1, kind: output, shape index: {}]  }
   0x1   :  { %v4_v0 = vld [vmem:[%s55_s0] sm:$0xf]  ;;  %s36_s0 = smov 96  }
   0x2   :  { %5 = vst [vmem:[#allocation1] sm:$0xf] %v4_v0 }
   0x9   :  { %v10_v1 = vld [vmem:[#allocation1 + $0x3] sm:$0x1]   ;;  %v22_v2 = vld [vmem:[#allocation1 + $0x1] sm:$0x1]   ;;  %v6_v3 = vld [vmem:[#allocation1] sm:$0x1]  }
   0xa   :  { %11 = vrot.lane.b32.xlu0 %v10_v1, %s36_s0  ;;  %23 = vrot.lane.b32.xlu1 %v22_v2, %s37_s8  ;;  %v16_v4 = vld [vmem:[#allocation1 + $0x2] sm:$0x1]   ;;  %8 = vst.msk [vmem:[#allocation0] sm:$0x1] %vm7_vm0, %v6_v3  }
   0xe   :  { %17 = vrot.lane.b32.xlu0 %v16_v4, %s38_s9 }
  0x7c   :  { %v12_v5 = vpop.permute.xlu0 %11   ;;  %v24_v6 = vpop.permute.xlu1 %23  }
  0x7d   :  { %14 = vst.msk [vmem:[#allocation0] sm:$0x1] %vm13_vm1, %v12_v5  }
  0x80   :  { %v18_v7 = vpop.permute.xlu0 %17  }
  0x81   :  { %20 = vst.msk [vmem:[#allocation0] sm:$0x1] %vm19_vm2, %v18_v7  }
  0x82   :  { %26 = vst.msk [vmem:[#allocation0] sm:$0x1] %vm25_vm3, %v24_v6  }
  0x89   :  { %v30_v8 = vld [vmem:[#allocation0] sm:$0x1] }
  0x8a   :  { %32 = vst [vmem:[%s56_s1] sm:$0x1] %v30_v8 }

// kernel: tile.18
= control target key start
LH: loop header
LB: loop body
LE: loop exit
PB: predicated region body
PF: predicated region fallthrough
CT: control target
= control target key end

     0   :  { %s22_s0 = inlined_call_operand.vmem [shape: f32[64], index: 0, kind: input, shape index: {}]   ;;  %s23_s1 = inlined_call_operand.vmem [shape: f32[4,64], index: 1, kind: output, shape index: {}]  }
   0x1   :  { %v4_v0 = vld [vmem:[%s22_s0] ss:$0 sm:$0xff] }
   0x2   :  { %5 = vst [vmem:[%s23_s1] sm:$0xf] %v4_v0 }

// kernel: tile.19
= control target key start
LH: loop header
LB: loop body
LE: loop exit
PB: predicated region body
PF: predicated region fallthrough
CT: control target
= control target key end

     0   :  { %s6_s8 = smov 3  ;;  %vm8_vm0 = vcmask 523264   ;;  %s30_s9 = smov 64   ;;  %vm15_vm1 = vcmask 1048064   ;;  %s50_s0 = inlined_call_operand.vmem [shape: f32[4,64], index: 0, kind: input, shape index: {}]   ;;  %s51_s1 = inlined_call_operand.vmem [shape: f32[1,256], index: 1, kind: output, shape index: {}]  }
   0x1   :  { %v4_v0 = vld [vmem:[%s50_s0] sm:$0xf]  ;;  %s11_s0 = smov 3 }
   0x2   :  { %5 = vst [vmem:[#allocation1] sm:$0xf] %v4_v0 }
   0x9   :  { %v12_v1 = vld [vmem:[#allocation1 + $0x1] ss:$2 sm:%s11_s0]   ;;  %v7_v2 = vld [vmem:[#allocation1] ss:$2 sm:%s6_s8]  }
   0xa   :  { %13 = vrot.lane.b32.xlu0 %v12_v1, %s30_s9  ;;  %9 = vst.msk [vmem:[#allocation0] ss:$8 sm:$0x3] %vm8_vm0, %v7_v2  }
  0x7c   :  { %v14_v3 = vpop.permute.xlu0 %13  }
  0x7d   :  { %16 = vst.msk [vmem:[#allocation0] ss:$8 sm:$0x3] %vm15_vm1, %v14_v3  }
  0x84   :  { %v20_v4 = vld [vmem:[#allocation0] sm:$0x1]  ;;  %v24_v5 = vld [vmem:[#allocation0 + $0x8] sm:$0x1] }
  0x85   :  { %22 = vst [vmem:[%s51_s1] sm:$0x1] %v20_v4  ;;  %28 = vst [vmem:[%s51_s1 + $0x1] sm:$0x1] %v24_v5 }

// kernel: pam_shallow2depth.4
= control target key start
LH: loop header
LB: loop body
LE: loop exit
PB: predicated region body
PF: predicated region fallthrough
CT: control target
= control target key end

     0   :  { %s625_s9 = smov 0   ;;  %s627_s10 = smov 0   ;;  %s678_s0 = inlined_call_operand.vmem [shape: f32[2,16,32], index: 0, kind: input, shape index: {}]   ;;  %s679_s1 = inlined_call_operand.vmem [shape: f32[2,16,32], index: 1, kind: input, shape index: {}]   ;;  %s680_s2 = inlined_call_operand.vmem [shape: f32[2,16,32], index: 2, kind: output, shape index: {}]  }
   0x1   :  { %s629_s11 = smov 0  }
   0x2 LB: > { %s24_s12 = sadd.s32 1, %s604_s10  ;;  %p504_p0 = scmp.ge.s32.totalorder %s608_s11, 1  ;;  %s608_s11 = sphi %s629_s11, %s12_s11   ;;  %s604_s10 = sphi %s627_s10, %s682_s10   ;;  %s600_s9 = sphi %s625_s9, %s681_s9  }
   0x3   : > { %p26_p1 = scmp.ge.s32.totalorder %s24_s12, 2  ;;  %p143_p2 = scmp.lt.s32.totalorder %s608_s11, 3 }
   0x5   : > { %s684_s12 = smov (%p26_p1, %s24_s12), 0  ;;  %p144_p3 = pnand %p504_p0, %p143_p2 }
   0x6   : > { %p179_p4 = scmp.lt.s32.totalorder (!%p144_p3), %s600_s9, 1  ;;  %vm207_vm0 = vcmask (!%p144_p3), 261120   ;;  %vm295_vm2 = vcmask (!%p144_p3), 130048  }
   0x7   : > { %147 = sbr.rel (%p144_p3) target bundleno = 773 (0x305), region = 28  ;;  %vm545_vm1 = vmpackc.low (!%p144_p3), %vm207_vm0, %vm207_vm0 }
   0xe   : > { %s686_s9 = smov (!%p179_p4, %s600_s9), 1 }
   0xf   : > { %s643_s13 = sshll.u32 %s686_s9, 4 }
  0x10   : > { %s192_s16 = scalar_lea.vmem %s679_s1, %s643_s13  ;;  %s186_s19 = scalar_lea.vmem %s678_s0, %s643_s13 }
  0x11   : > { %v205_v0 = vld [vmem:[%s192_s16] sm:$0xff]  ;;  %v206_v1 = vld [vmem:[%s192_s16 + $0x8] sm:$0xff]  ;;  %s201_s22 = scalar_lea.vmem %s680_s2, %s643_s13 }
  0x12   : > { %v203_v2 = vld [vmem:[%s186_s19] sm:$0xff]  ;;  %v544_v3 = vpack.c.bf16 %v206_v1, %v205_v0  ;;  %v204_v4 = vld [vmem:[%s186_s19 + $0x8] sm:$0xff] }
  0x13   : > { %534 = vmatprep.mubr.msk.f32.mxu0 %vm207_vm0, %v203_v2 }
  0x14   : > { %546 = vmatprep.subr.msk.bf16.mxu0 %vm545_vm1, %v544_v3  ;;  %551 = vmatprep.subr.bf16.mxu1 %v544_v3 }
  0x15   : > { %549 = vmatpush3.bf16.xpose.msk.msra.mxu0 %vm545_vm1, %v544_v3  ;;  %553 = vmatpush3.bf16.msra.mxu1 %v544_v3 }
  0x1c   : > { %535 = vmatmul.mubr.msk.f32.vlgmr.msra.gmra.mrb[0].mxu0 %vm207_vm0, %v204_v4 }
  0xef   : > { %v536_v5 = vpop.f32.mrb[0].mxu0 }
  0xf0   : > { %v286_v6 = vpop.f32.mrb[1].mxu0  ;;  %v299_v8 = vsel %vm295_vm2, %v536_v5, -inf }
  0xf1   : > { %v296_v7 = vsel %vm295_vm2, %v286_v6, -inf }
  0xf2   : > { %297 = vmax.xlane.f32.xlu0 %v296_v7 }
  0xf6   : > { %300 = vmax.xlane.f32.xlu0 %v299_v8 }
 0x17f   : > { %v298_v9 = vpop.xlane.xlu0 %297 }
 0x180   : > { %v302_v10 = vsub.f32 %v286_v6, %v298_v9 }
 0x182   : > { %v304_v11 = vmul.f32 1.442695, %v302_v10 }
 0x183   : > { %v301_v12 = vpop.xlane.xlu0 %300 }
 0x184   : > { %578 = vpow2.f32 %v304_v11  ;;  %v303_v13 = vsub.f32 %v536_v5, %v301_v12 }
 0x186   : > { %v306_v14 = vmul.f32 1.442695, %v303_v13 }
 0x188   : > { %580 = vpow2.f32 %v306_v14 }
 0x18e   : > { %v579_v15 = vpop.eup %578 }
 0x18f   : > { %v308_v16 = vsel %vm295_vm2, %v579_v15, 0.0 }
 0x190   : > { %309 = vadd.xlane.f32.xlu1 %v308_v16 }
 0x192   : > { %v581_v17 = vpop.eup %580 }
 0x193   : > { %v311_v18 = vsel %vm295_vm2, %v581_v17, 0.0 }
 0x194   : > { %312 = vadd.xlane.f32.xlu1 %v311_v18 }
 0x21d   : > { %v310_v19 = vpop.xlane.xlu1 %309 }
 0x21e   : > { %582 = vrcp.f32 %v310_v19 }
 0x221   : > { %v313_v20 = vpop.xlane.xlu1 %312 }
 0x222   : > { %584 = vrcp.f32 %v313_v20 }
 0x228   : > { %v583_v21 = vpop.eup %582 }
 0x229   : > { %v316_v22 = vmul.f32 %v583_v21, %v579_v15 }
 0x22b   : > { %541 = vmatprep.mubr.msk.f32.mxu1 %vm295_vm2, %v316_v22 }
 0x22c   : > { %v585_v23 = vpop.eup %584 }
 0x22d   : > { %v317_v24 = vmul.f32 %v585_v23, %v581_v17 }
 0x22f   : > { %542 = vmatmul.mubr.msk.f32.vlgmr.msra.gmra.mrb[0].mxu1 %vm295_vm2, %v317_v24 }
 0x302   : > { %v543_v25 = vpop.f32.mrb[0].mxu1 }
 0x303   : > { %400 = vst.msk [vmem:[%s201_s22 + $0x8] sm:$0xff] %vm207_vm0, %v543_v25  ;;  %v390_v26 = vpop.f32.mrb[1].mxu1 }
 0x304   : > { %399 = vst.msk [vmem:[%s201_s22] sm:$0xff] %vm207_vm0, %v390_v26 }
 0x305 PF: > { %s12_s11 = sadd.s32 1, %s608_s11   ;;  %s681_s9 = smov %s604_s10 }
 0x306   : > { %p9_p5 = scmp.ge.s32.totalorder %s12_s11, 4   ;;  %s682_s10 = smov %s684_s12 }
 0x308   :  { %11 = sbr.rel (!%p9_p5) target bundleno = 2 (0x2), region = 61 }

// kernel: pam_shallow2depth.3
= control target key start
LH: loop header
LB: loop body
LE: loop exit
PB: predicated region body
PF: predicated region fallthrough
CT: control target
= control target key end

     0   :  { %s1260_s18 = smov 0   ;;  %s1262_s19 = smov 0   ;;  %s1494_s0 = inlined_call_operand.vmem [shape: f32[2,16,4,256], index: 0, kind: input, shape index: {}]   ;;  %s1495_s1 = inlined_call_operand.vmem [shape: f32[2,16,4,128], index: 1, kind: input, shape index: {}]   ;;  %s1496_s2 = inlined_call_operand.vmem [shape: f32[256,128], index: 2, kind: input, shape index: {}]   ;;  %s1497_s3 = inlined_call_operand.vmem [shape: f32[1,128], index: 3, kind: input, shape index: {}]   ;;  %s1498_s4 = inlined_call_operand.vmem [shape: f32[2,4,4,32], index: 4, kind: output, shape index: {0}]   ;;  %s1499_s5 = inlined_call_operand.vmem [shape: f32[2,4,4,32], index: 5, kind: output, shape index: {1}]  }
   0x1   :  { %s1264_s20 = smov 0   ;;  %s1266_s21 = smov 0  }
   0x2   :  { %s1268_s22 = smov 0  }
   0x3 LB: > { %s25_s23 = sadd.s32 1, %s1218_s20  ;;  %s28_s24 = sadd.s32 1, %s1222_s21  ;;  %s1226_s22 = sphi %s1268_s22, %s16_s22   ;;  %s1222_s21 = sphi %s1266_s21, %s1503_s21   ;;  %s1218_s20 = sphi %s1264_s20, %s1502_s20   ;;  %s1214_s19 = sphi %s1262_s19, %s1501_s19   ;;  %s1210_s18 = sphi %s1260_s18, %s1500_s18  }
   0x4   : > { %p26_p0 = scmp.ge.s32.totalorder %s25_s23, 4  ;;  %p853_p1 = scmp.ge.s32.totalorder %s1226_s22, 1 }
   0x5   : > { %p231_p2 = scmp.lt.s32.totalorder %s1226_s22, 9 }
   0x6   : > { %s1505_s23 = smov (%p26_p0, %s25_s23), 0  ;;  %s1507_s24 = smov (!%p26_p0, %s28_s24), %s1222_s21 }
   0x7   : > { %p232_p3 = pnand %p853_p1, %p231_p2  ;;  %p30_p4 = scmp.ge.s32.totalorder %s1507_s24, 2 }
   0x8   : > { %v337_v0 = vld [vmem:[%s1496_s2 + $0x80] sm:$0xff] (!%p232_p3)  ;;  %v338_v1 = vld [vmem:[%s1496_s2 + $0x88] sm:$0xff] (!%p232_p3)  ;;  %s854_s6 = sshll.u32 (!%p232_p3), %s1210_s18, 2  ;;  %p285_p5 = scmp.lt.s32.totalorder (!%p232_p3), %s1214_s19, 1  ;;  %v339_v5 = vld [vmem:[%s1496_s2 + $0x90] sm:$0xff] (!%p232_p3)  ;;  %vm672_vm0 = vcmask (!%p232_p3), 257024  }
   0x9   : > { %s1509_s24 = smov (%p30_p4, %s1507_s24), 0  ;;  %235 = sbr.rel (%p232_p3) target bundleno = 536 (0x218), region = 36 }
   0xa   : > { %v321_v2 = vld [vmem:[%s1496_s2] sm:$0xff] (!%p232_p3)  ;;  %v1305_v3 = vpack.c.bf16 (!%p232_p3), %v338_v1, %v337_v0  ;;  %v322_v4 = vld [vmem:[%s1496_s2 + $0x8] sm:$0xff] (!%p232_p3)  ;;  %v340_v6 = vld [vmem:[%s1496_s2 + $0x98] sm:$0xff] (!%p232_p3)  ;;  %p287_p6 = scmp.lt.s32.totalorder (!%p232_p3), %s854_s6, 15  ;;  %s1229_s13 = smov (!%p232_p3), 64  }
   0xb   : > { %v1316_v7 = vpack.c.bf16 (!%p232_p3), %v322_v4, %v321_v2  ;;  %v1318_v8 = vpack.c.bf16 (!%p232_p3), %v340_v6, %v339_v5  ;;  %v323_v9 = vld [vmem:[%s1496_s2 + $0x10] sm:$0xff] (!%p232_p3)  ;;  %v324_v10 = vld [vmem:[%s1496_s2 + $0x18] sm:$0xff] (!%p232_p3)  ;;  %v341_v11 = vld [vmem:[%s1496_s2 + $0xa0] sm:$0xff] (!%p232_p3)  ;;  %p307_p7 = scmp.lt.s32.totalorder (!%p232_p3), %s1210_s18, 3 }
   0xc   : > { %1015 = vmatprep.subr.bf16.mxu0 (!%p232_p3), %v1305_v3  ;;  %1047 = vmatprep.subr.bf16.mxu1 (!%p232_p3), %v1305_v3  ;;  %v342_v12 = vld [vmem:[%s1496_s2 + $0xa8] sm:$0xff] (!%p232_p3)  ;;  %v1341_v13 = vpack.c.bf16 (!%p232_p3), %v324_v10, %v323_v9  ;;  %v325_v15 = vld [vmem:[%s1496_s2 + $0x20] sm:$0xff] (!%p232_p3)  ;;  %v343_v17 = vld [vmem:[%s1496_s2 + $0xb0] sm:$0xff] (!%p232_p3) }
   0xd   : > { %1017 = vmatpush3.bf16.msra.mxu0 (!%p232_p3), %v1316_v7  ;;  %1049 = vmatpush3.bf16.msra.mxu1 (!%p232_p3), %v1316_v7  ;;  %v1346_v14 = vpack.c.bf16 (!%p232_p3), %v342_v12, %v341_v11  ;;  %v326_v16 = vld [vmem:[%s1496_s2 + $0x28] sm:$0xff] (!%p232_p3)  ;;  %v344_v18 = vld [vmem:[%s1496_s2 + $0xb8] sm:$0xff] (!%p232_p3)  ;;  %v327_v21 = vld [vmem:[%s1496_s2 + $0x30] sm:$0xff] (!%p232_p3) }
   0xe   : > { %1019 = vmatprep.subr.bf16.mxu0 (!%p232_p3), %v1318_v8  ;;  %1051 = vmatprep.subr.bf16.mxu1 (!%p232_p3), %v1318_v8  ;;  %v1363_v19 = vpack.c.bf16 (!%p232_p3), %v326_v16, %v325_v15  ;;  %v1372_v20 = vpack.c.bf16 (!%p232_p3), %v344_v18, %v343_v17  ;;  %v328_v22 = vld [vmem:[%s1496_s2 + $0x38] sm:$0xff] (!%p232_p3)  ;;  %v345_v23 = vld [vmem:[%s1496_s2 + $0xc0] sm:$0xff] (!%p232_p3)  ;;  %v346_v24 = vld [vmem:[%s1496_s2 + $0xc8] sm:$0xff] (!%p232_p3) }
   0xf   : > { %v1390_v28 = vpack.c.bf16 (!%p232_p3), %v328_v22, %v327_v21  ;;  %v1394_v30 = vpack.c.bf16 (!%p232_p3), %v346_v24, %v345_v23  ;;  %v329_v31 = vld [vmem:[%s1496_s2 + $0x40] sm:$0xff] (!%p232_p3)  ;;  %v330_v32 = vld [vmem:[%s1496_s2 + $0x48] sm:$0xff] (!%p232_p3)  ;;  %v347_v33 = vld [vmem:[%s1496_s2 + $0xd0] sm:$0xff] (!%p232_p3) }
  0x10   : > { %s1511_s19 = smov (!%p285_p5, %s1214_s19), 1  ;;  %s1513_s6 = smov (!%p287_p6, %s854_s6), 15  ;;  %v348_v34 = vld [vmem:[%s1496_s2 + $0xd8] sm:$0xff]  ;;  %v1032_v35 = vpack.c.bf16 %v330_v32, %v329_v31  ;;  %v331_v37 = vld [vmem:[%s1496_s2 + $0x50] sm:$0xff]  ;;  %v349_v39 = vld [vmem:[%s1496_s2 + $0xe0] sm:$0xff] }
  0x11   : > { %s856_s28 = sshll.u32 %s1511_s19, 5  ;;  %s855_s9 = sshll.u32 %s1513_s6, 1  ;;  %1021 = vmatpush3.bf16.msra.mxu0 %v1341_v13  ;;  %1053 = vmatpush3.bf16.msra.mxu1 %v1341_v13  ;;  %v1034_v36 = vpack.c.bf16 %v348_v34, %v347_v33  ;;  %v332_v38 = vld [vmem:[%s1496_s2 + $0x58] sm:$0xff]  ;;  %v350_v40 = vld [vmem:[%s1496_s2 + $0xe8] sm:$0xff]  ;;  %v333_v43 = vld [vmem:[%s1496_s2 + $0x60] sm:$0xff] }
  0x12   : > { %s291_s14 = sadd.s32 %s856_s28, %s855_s9  ;;  %1023 = vmatprep.subr.bf16.mxu0 %v1346_v14  ;;  %1055 = vmatprep.subr.bf16.mxu1 %v1346_v14  ;;  %v1036_v41 = vpack.c.bf16 %v332_v38, %v331_v37  ;;  %v1038_v42 = vpack.c.bf16 %v350_v40, %v349_v39  ;;  %v334_v44 = vld [vmem:[%s1496_s2 + $0x68] sm:$0xff]  ;;  %v351_v45 = vld [vmem:[%s1496_s2 + $0xf0] sm:$0xff]  ;;  %v352_v46 = vld [vmem:[%s1496_s2 + $0xf8] sm:$0xff]  ;;  %s859_s7 = sshll.u32 %s1511_s19, 4 }
  0x13   : > { %s857_s15 = sshll.u32 %s291_s14, 2  ;;  %v1040_v47 = vpack.c.bf16 %v334_v44, %v333_v43  ;;  %v1042_v48 = vpack.c.bf16 %v352_v46, %v351_v45  ;;  %v335_v49 = vld [vmem:[%s1496_s2 + $0x70] sm:$0xff]  ;;  %v336_v50 = vld [vmem:[%s1496_s2 + $0x78] sm:$0xff]  ;;  %v865_v58 = vld [vmem:[%s1497_s3] ss:$0 sm:$0xff]  ;;  %s301_s8 = sadd.s32 %s859_s7, %s1513_s6 }
  0x14   : > { %s1368_s25 = scalar_lea.vmem %s1494_s0, %s857_s15  ;;  %v1044_v51 = vpack.c.bf16 %v336_v50, %v335_v49  ;;  %s860_s9 = sshll.u32 %s301_s8, 2 }
  0x15   : > { %v354_v25 = vld [vmem:[%s1368_s25] sm:$0xff]  ;;  %v866_v27 = vld [vmem:[%s1368_s25 + $0x8] sm:$0xff]  ;;  %1025 = vmatpush3.bf16.msra.mxu0 %v1363_v19  ;;  %1057 = vmatpush3.bf16.msra.mxu1 %v1363_v19  ;;  %v867_v52 = vld [vmem:[%s1368_s25 + $0x10] sm:$0xff]  ;;  %s303_s12 = scalar_lea.vmem %s1495_s1, %s860_s9  ;;  %s1228_s6 = smov 96  }
  0x16   : > { %v362_v26 = vcombine.high %v354_v25, %v354_v25  ;;  %v437_v29 = vcombine.high %v866_v27, %v866_v27  ;;  %1027 = vmatprep.subr.bf16.mxu0 %v1372_v20  ;;  %1059 = vmatprep.subr.bf16.mxu1 %v1372_v20  ;;  %v868_v53 = vld [vmem:[%s1368_s25 + $0x18] sm:$0xff]  ;;  %v512_v54 = vcombine.high %v867_v52, %v867_v52  ;;  %v869_v9 = vld [vmem:[%s303_s12 + $0x4] sm:$0xf]  ;;  %v870_v10 = vld [vmem:[%s303_s12 + $0x8] sm:$0xf]  ;;  %s1515_s18 = smov (!%p307_p7, %s1210_s18), 3 }
  0x17   : > { %v587_v55 = vcombine.high %v868_v53, %v868_v53  ;;  %v871_v11 = vld [vmem:[%s303_s12 + $0xc] sm:$0xf]  ;;  %s861_s14 = sshll.u32 %s1511_s19, 2 }
  0x18   : > { %428 = vmatprep.mubr.f32.mxu0 %v362_v26  ;;  %503 = vmatprep.mubr.f32.mxu1 %v437_v29  ;;  %v682_v16 = vmax.f32 %v870_v10, %v871_v11  ;;  %s310_s15 = sadd.s32 %s861_s14, %s1515_s18 }
  0x19   : > { %1029 = vmatpush3.bf16.msra.mxu0 %v1390_v28  ;;  %1061 = vmatpush3.bf16.msra.mxu1 %v1390_v28  ;;  %s862_s16 = sshll.u32 %s310_s15, 2 }
  0x1a   : > { %1031 = vmatprep.subr.bf16.mxu0 %v1394_v30  ;;  %1063 = vmatprep.subr.bf16.mxu1 %v1394_v30  ;;  %s312_s27 = scalar_lea.vmem %s1498_s4, %s862_s16  ;;  %s320_s25 = scalar_lea.vmem %s1499_s5, %s862_s16 }
  0x1d   : > { %1033 = vmatpush3.bf16.msra.mxu0 %v1032_v35  ;;  %1065 = vmatpush3.bf16.msra.mxu1 %v1032_v35 }
  0x1e   : > { %1035 = vmatprep.subr.bf16.mxu0 %v1034_v36  ;;  %1067 = vmatprep.subr.bf16.mxu1 %v1034_v36 }
  0x21   : > { %1037 = vmatpush3.bf16.msra.mxu0 %v1036_v41  ;;  %1069 = vmatpush3.bf16.msra.mxu1 %v1036_v41 }
  0x22   : > { %1039 = vmatprep.subr.bf16.mxu0 %v1038_v42  ;;  %1071 = vmatprep.subr.bf16.mxu1 %v1038_v42 }
  0x25   : > { %1041 = vmatpush3.bf16.msra.mxu0 %v1040_v47  ;;  %1073 = vmatpush3.bf16.msra.mxu1 %v1040_v47 }
  0x26   : > { %1043 = vmatprep.subr.bf16.mxu0 %v1042_v48  ;;  %1075 = vmatprep.subr.bf16.mxu1 %v1042_v48 }
  0x29   : > { %1045 = vmatpush3.bf16.msra.mxu0 %v1044_v51  ;;  %1077 = vmatpush3.bf16.msra.mxu1 %v1044_v51 }
  0x2a   : > { %1079 = vmatprep.subr.bf16.mxu0 %v1305_v3  ;;  %1111 = vmatprep.subr.bf16.mxu1 %v1305_v3 }
  0x2c   : > { %429 = vmatmul.mubr.f32.vlgmr.msra.gmra.mrb[0].mxu0 %v354_v25  ;;  %504 = vmatmul.mubr.f32.vlgmr.msra.gmra.mrb[0].mxu1 %v866_v27 }
  0x2d   : > { %1081 = vmatpush3.bf16.msra.mxu0 %v1316_v7  ;;  %1113 = vmatpush3.bf16.msra.mxu1 %v1316_v7 }
  0x2e   : > { %1083 = vmatprep.subr.bf16.mxu0 %v1318_v8  ;;  %1115 = vmatprep.subr.bf16.mxu1 %v1318_v8  ;;  %v674_v8 = vld [vmem:[%s303_s12] sm:$0xf] }
  0x2f   : > { %578 = vmatprep.mubr.f32.mxu0 %v512_v54  ;;  %653 = vmatprep.mubr.f32.mxu1 %v587_v55  ;;  %v677_v15 = vmax.f32 %v674_v8, %v869_v9 }
  0x31   : > { %1085 = vmatpush3.bf16.msra.mxu0 %v1341_v13  ;;  %1117 = vmatpush3.bf16.msra.mxu1 %v1341_v13  ;;  %v683_v18 = vmax.f32 %v677_v15, %v682_v16 }
  0x32   : > { %1087 = vmatprep.subr.bf16.mxu0 %v1346_v14  ;;  %1119 = vmatprep.subr.bf16.mxu1 %v1346_v14 }
  0x35   : > { %1089 = vmatpush3.bf16.msra.mxu0 %v1363_v19  ;;  %1121 = vmatpush3.bf16.msra.mxu1 %v1363_v19 }
  0x36   : > { %1091 = vmatprep.subr.bf16.mxu0 %v1372_v20  ;;  %1123 = vmatprep.subr.bf16.mxu1 %v1372_v20 }
  0x39   : > { %1093 = vmatpush3.bf16.msra.mxu0 %v1390_v28  ;;  %1125 = vmatpush3.bf16.msra.mxu1 %v1390_v28 }
  0x3a   : > { %1095 = vmatprep.subr.bf16.mxu0 %v1394_v30  ;;  %1127 = vmatprep.subr.bf16.mxu1 %v1394_v30 }
  0x3d   : > { %1097 = vmatpush3.bf16.msra.mxu0 %v1032_v35  ;;  %1129 = vmatpush3.bf16.msra.mxu1 %v1032_v35 }
  0x3e   : > { %1099 = vmatprep.subr.bf16.mxu0 %v1034_v36  ;;  %1131 = vmatprep.subr.bf16.mxu1 %v1034_v36 }
  0x41   : > { %1101 = vmatpush3.bf16.msra.mxu0 %v1036_v41  ;;  %1133 = vmatpush3.bf16.msra.mxu1 %v1036_v41 }
  0x42   : > { %1103 = vmatprep.subr.bf16.mxu0 %v1038_v42  ;;  %1135 = vmatprep.subr.bf16.mxu1 %v1038_v42 }
  0x45   : > { %1105 = vmatpush3.bf16.msra.mxu0 %v1040_v47  ;;  %1137 = vmatpush3.bf16.msra.mxu1 %v1040_v47 }
  0x46   : > { %1107 = vmatprep.subr.bf16.mxu0 %v1042_v48  ;;  %1139 = vmatprep.subr.bf16.mxu1 %v1042_v48 }
  0x49   : > { %1109 = vmatpush3.bf16.msra.mxu0 %v1044_v51  ;;  %1141 = vmatpush3.bf16.msra.mxu1 %v1044_v51 }
  0x4c   : > { %579 = vmatmul.mubr.f32.vlgmr.msra.gmra.mrb[2].mxu0 %v867_v52  ;;  %654 = vmatmul.mubr.f32.vlgmr.msra.gmra.mrb[2].mxu1 %v868_v53 }
  0xff   : > { %v906_v56 = vpop.f32.mrb[0].mxu0  ;;  %v941_v57 = vpop.f32.mrb[0].mxu1 }
 0x100   : > { %v907_v59 = vpop.f32.mrb[1].mxu0  ;;  %v942_v60 = vpop.f32.mrb[1].mxu1 }
 0x101   : > { %v908_v61 = vadd.f32 %v907_v59, %v906_v56  ;;  %v943_v62 = vadd.f32 %v942_v60, %v941_v57 }
 0x103   : > { %v431_v63 = vadd.f32 %v908_v61, %v865_v58  ;;  %v506_v0 = vadd.f32 %v943_v62, %v865_v58 }
 0x105   : > { %v659_v1 = vmax.f32 %v431_v63, %v506_v0 }
 0x11f   : > { %v976_v2 = vpop.f32.mrb[2].mxu0  ;;  %v1011_v3 = vpop.f32.mrb[2].mxu1 }
 0x120   : > { %v977_v4 = vpop.f32.mrb[3].mxu0  ;;  %v1012_v5 = vpop.f32.mrb[3].mxu1 }
 0x121   : > { %v978_v6 = vadd.f32 %v977_v4, %v976_v2  ;;  %v1013_v7 = vadd.f32 %v1012_v5, %v1011_v3 }
 0x123   : > { %v581_v12 = vadd.f32 %v978_v6, %v865_v58  ;;  %v656_v13 = vadd.f32 %v1013_v7, %v865_v58 }
 0x125   : > { %v660_v14 = vmax.f32 %v581_v12, %v656_v13 }
 0x127   : > { %v661_v17 = vmax.f32 %v659_v1, %v660_v14 }
 0x129   : > { %663 = vrot.lane.b32.xlu0 %v661_v17, %s1228_s6 }
 0x12d   : > { %685 = vrot.lane.b32.xlu0 %v683_v18, %s1228_s6 }
 0x19b   : > { %v664_v19 = vpop.permute.xlu0 %663 }
 0x19c   : > { %v666_v20 = vmax.f32 %v661_v17, %v664_v19 }
 0x19e   : > { %668 = vrot.lane.b32.xlu1 %v666_v20, %s1229_s13 }
 0x19f   : > { %v686_v21 = vpop.permute.xlu0 %685 }
 0x1a0   : > { %v688_v22 = vmax.f32 %v683_v18, %v686_v21 }
 0x1a2   : > { %690 = vrot.lane.b32.xlu1 %v688_v22, %s1229_s13 }
 0x210   : > { %v669_v23 = vpop.permute.xlu1 %668 }
 0x211   : > { %v671_v24 = vmax.f32 %v666_v20, %v669_v23 }
 0x213   : > { %673 = vst.msk [vmem:[%s312_s27] sm:$0xf] %vm672_vm0, %v671_v24 }
 0x214   : > { %v691_v25 = vpop.permute.xlu1 %690 }
 0x215   : > { %v693_v26 = vmax.f32 %v688_v22, %v691_v25 }
 0x217   : > { %694 = vst.msk [vmem:[%s320_s25] sm:$0xf] %vm672_vm0, %v693_v26 }
 0x218 PF: > { %s16_s22 = sadd.s32 1, %s1226_s22   ;;  %s1500_s18 = smov %s1218_s20 }
 0x219   : > { %p13_p8 = scmp.ge.s32.totalorder %s16_s22, 10   ;;  %s1501_s19 = smov %s1222_s21 }
 0x21a   : > { %s1502_s20 = smov %s1505_s23  ;;  %s1503_s21 = smov %s1509_s24 }
 0x21b   :  { %15 = sbr.rel (!%p13_p8) target bundleno = 3 (0x3), region = 87 }

// kernel: pam_shallow2depth.5
= control target key start
LH: loop header
LB: loop body
LE: loop exit
PB: predicated region body
PF: predicated region fallthrough
CT: control target
= control target key end

     0   :  { %s2205_s24 = smov 0   ;;  %s2207_s25 = smov 0   ;;  %s3017_s0 = inlined_call_operand.vmem [shape: f32[2,16,4,128], index: 0, kind: input, shape index: {}]   ;;  %s3018_s1 = inlined_call_operand.vmem [shape: f32[2,16,4,256], index: 1, kind: input, shape index: {}]   ;;  %s3019_s2 = inlined_call_operand.vmem [shape: f32[2,4,4,32], index: 2, kind: input, shape index: {}]   ;;  %s3020_s3 = inlined_call_operand.vmem [shape: f32[128,256], index: 3, kind: input, shape index: {}]   ;;  %s3021_s4 = inlined_call_operand.vmem [shape: f32[256,256], index: 4, kind: input, shape index: {}]   ;;  %s3022_s5 = inlined_call_operand.vmem [shape: f32[4,32,256], index: 5, kind: input, shape index: {}]   ;;  %s3023_s6 = inlined_call_operand.vmem [shape: f32[1,256], index: 6, kind: input, shape index: {}]   ;;  %s3024_s7 = inlined_call_operand.vmem [shape: f32[2,16,4,256], index: 7, kind: output, shape index: {}]  }
   0x1   :  { %s2209_s26 = smov 0   ;;  %s2211_s27 = smov 0  }
   0x2   :  { %s2213_s28 = smov 0  }
   0x3 LB: > { %s26_s29 = sadd.s32 1, %s2154_s26  ;;  %s29_s30 = sadd.s32 1, %s2158_s27  ;;  %s2162_s28 = sphi %s2213_s28, %s17_s28   ;;  %s2158_s27 = sphi %s2211_s27, %s3043_s27   ;;  %s2154_s26 = sphi %s2209_s26, %s3042_s26   ;;  %s2150_s25 = sphi %s2207_s25, %s3041_s25   ;;  %s2146_s24 = sphi %s2205_s24, %s3040_s24  }
   0x4   : > { %p27_p0 = scmp.ge.s32.totalorder %s26_s29, 4  ;;  %p1594_p1 = scmp.ge.s32.totalorder %s2162_s28, 1 }
   0x5   : > { %p291_p2 = scmp.lt.s32.totalorder %s2162_s28, 9 }
   0x6   : > { %s3045_s29 = smov (%p27_p0, %s26_s29), 0  ;;  %s3047_s30 = smov (!%p27_p0, %s29_s30), %s2158_s27 }
   0x7   : > { %p292_p3 = pnand %p1594_p1, %p291_p2  ;;  %p31_p4 = scmp.ge.s32.totalorder %s3047_s30, 2 }
   0x9   : > { %s3049_s30 = smov (%p31_p4, %s3047_s30), 0  ;;  %295 = sbr.rel (%p292_p3) target bundleno = 445 (0x1bd), region = 48 }
  0x10   : > { %v423_v0 = vld [vmem:[%s3021_s4 + $0x8] sm:$0xff]  ;;  %v425_v1 = vld [vmem:[%s3021_s4 + $0x18] sm:$0xff]  ;;  %v422_v2 = vld [vmem:[%s3021_s4] sm:$0xff]  ;;  %s1595_s14 = sshll.u32 %s2146_s24, 2  ;;  %p351_p5 = scmp.lt.s32.totalorder %s2150_s25, 1  ;;  %vm643_vm0 = vcmask 261120  }
  0x11   : > { %v2250_v3 = vpack.c.bf16 %v425_v1, %v423_v0  ;;  %v424_v4 = vld [vmem:[%s3021_s4 + $0x10] sm:$0xff]  ;;  %v427_v5 = vld [vmem:[%s3021_s4 + $0x28] sm:$0xff]  ;;  %v429_v6 = vld [vmem:[%s3021_s4 + $0x38] sm:$0xff]  ;;  %p353_p6 = scmp.lt.s32.totalorder %s1595_s14, 15  ;;  %p373_p7 = scmp.lt.s32.totalorder %s2146_s24, 3 }
  0x12   : > { %v2261_v7 = vpack.c.bf16 %v424_v4, %v422_v2  ;;  %v2263_v8 = vpack.c.bf16 %v429_v6, %v427_v5  ;;  %v426_v9 = vld [vmem:[%s3021_s4 + $0x20] sm:$0xff]  ;;  %v428_v10 = vld [vmem:[%s3021_s4 + $0x30] sm:$0xff]  ;;  %v431_v11 = vld [vmem:[%s3021_s4 + $0x48] sm:$0xff]  ;;  %s3051_s25 = smov (!%p351_p5, %s2150_s25), 1 }
  0x13   : > { %1648 = vmatprep.subr.bf16.mxu0 %v2250_v3  ;;  %1752 = vmatprep.subr.bf16.mxu1 %v2250_v3  ;;  %v433_v12 = vld [vmem:[%s3021_s4 + $0x58] sm:$0xff]  ;;  %s3053_s14 = smov (!%p353_p6, %s1595_s14), 15  ;;  %v2286_v13 = vpack.c.bf16 %v428_v10, %v426_v9  ;;  %s1596_s13 = sshll.u32 %s3051_s25, 4  ;;  %v430_v15 = vld [vmem:[%s3021_s4 + $0x40] sm:$0xff]  ;;  %v432_v16 = vld [vmem:[%s3021_s4 + $0x50] sm:$0xff] }
  0x14   : > { %1650 = vmatpush1.bf16.msra.mxu0 %v2261_v7  ;;  %1754 = vmatpush1.bf16.msra.mxu1 %v2261_v7  ;;  %v2291_v14 = vpack.c.bf16 %v433_v12, %v431_v11  ;;  %s2300_s19 = sadd.s32 %s1596_s13, %s3053_s14  ;;  %v435_v17 = vld [vmem:[%s3021_s4 + $0x68] sm:$0xff]  ;;  %v437_v18 = vld [vmem:[%s3021_s4 + $0x78] sm:$0xff]  ;;  %v2310_v19 = vpack.c.bf16 %v432_v16, %v430_v15  ;;  %v434_v21 = vld [vmem:[%s3021_s4 + $0x60] sm:$0xff]  ;;  %s1599_s12 = sshll.u32 %s3053_s14, 1 }
  0x15   : > { %1652 = vmatprep.subr.bf16.mxu0 %v2263_v8  ;;  %1756 = vmatprep.subr.bf16.mxu1 %v2263_v8  ;;  %v2314_v20 = vpack.c.bf16 %v437_v18, %v435_v17  ;;  %v436_v22 = vld [vmem:[%s3021_s4 + $0x70] sm:$0xff]  ;;  %s1600_s13 = sshll.u32 %s3051_s25, 5  ;;  %v439_v23 = vld [vmem:[%s3021_s4 + $0x88] sm:$0xff]  ;;  %v441_v24 = vld [vmem:[%s3021_s4 + $0x98] sm:$0xff]  ;;  %s1597_s23 = sshll.u32 %s2300_s19, 2 }
  0x16   : > { %v2332_v25 = vpack.c.bf16 %v436_v22, %v434_v21  ;;  %s2334_s20 = sadd.s32 %s1600_s13, %s1599_s12  ;;  %v2338_v26 = vpack.c.bf16 %v441_v24, %v439_v23  ;;  %v438_v27 = vld [vmem:[%s3021_s4 + $0x80] sm:$0xff]  ;;  %v440_v28 = vld [vmem:[%s3021_s4 + $0x90] sm:$0xff]  ;;  %v443_v29 = vld [vmem:[%s3021_s4 + $0xa8] sm:$0xff]  ;;  %s3055_s24 = smov (!%p373_p7, %s2146_s24), 3 }
  0x17   : > { %v445_v30 = vld [vmem:[%s3021_s4 + $0xb8] sm:$0xff]  ;;  %s1601_s12 = sshll.u32 %s2334_s20, 2  ;;  %v2355_v31 = vpack.c.bf16 %v440_v28, %v438_v27  ;;  %v442_v33 = vld [vmem:[%s3021_s4 + $0xa0] sm:$0xff]  ;;  %v444_v34 = vld [vmem:[%s3021_s4 + $0xb0] sm:$0xff]  ;;  %s1602_s21 = sshll.u32 %s3051_s25, 2 }
  0x18   : > { %1654 = vmatpush1.bf16.msra.mxu0 %v2286_v13  ;;  %1758 = vmatpush1.bf16.msra.mxu1 %v2286_v13  ;;  %v2359_v32 = vpack.c.bf16 %v445_v30, %v443_v29  ;;  %v447_v35 = vld [vmem:[%s3021_s4 + $0xc8] sm:$0xff]  ;;  %v449_v36 = vld [vmem:[%s3021_s4 + $0xd8] sm:$0xff]  ;;  %s2378_s9 = scalar_lea.vmem %s3018_s1, %s1601_s12  ;;  %v2382_v37 = vpack.c.bf16 %v444_v34, %v442_v33  ;;  %v446_v39 = vld [vmem:[%s3021_s4 + $0xc0] sm:$0xff]  ;;  %s2781_s10 = scalar_lea.vmem %s3017_s0, %s1597_s23 }
  0x19   : > { %1656 = vmatprep.subr.bf16.mxu0 %v2291_v14  ;;  %1760 = vmatprep.subr.bf16.mxu1 %v2291_v14  ;;  %v2386_v38 = vpack.c.bf16 %v449_v36, %v447_v35  ;;  %v448_v40 = vld [vmem:[%s3021_s4 + $0xd0] sm:$0xff]  ;;  %v2395_v41 = vld [vmem:[%s2378_s9] sm:$0xff]  ;;  %v451_v42 = vld [vmem:[%s3021_s4 + $0xe8] sm:$0xff]  ;;  %s376_s11 = sadd.s32 %s1602_s21, %s3055_s24  ;;  %s388_s16 = scalar_lea.vmem %s3024_s7, %s1601_s12 }
  0x1a   : > { %v453_v43 = vld [vmem:[%s3021_s4 + $0xf8] sm:$0xff]  ;;  %v491_v44 = vcombine.high %v2395_v41, %v2395_v41  ;;  %v2406_v45 = vld [vmem:[%s2378_s9 + $0x8] sm:$0xff]  ;;  %v2412_v47 = vpack.c.bf16 %v448_v40, %v446_v39  ;;  %v450_v49 = vld [vmem:[%s3021_s4 + $0xe0] sm:$0xff]  ;;  %s1603_s18 = sshll.u32 %s376_s11, 2 }
  0x1b   : > { %v743_v46 = vcombine.high %v2406_v45, %v2406_v45  ;;  %v2416_v48 = vpack.c.bf16 %v453_v43, %v451_v42  ;;  %v452_v50 = vld [vmem:[%s3021_s4 + $0xf0] sm:$0xff]  ;;  %v455_v51 = vld [vmem:[%s3021_s4 + $0x108] sm:$0xff]  ;;  %v457_v52 = vld [vmem:[%s3021_s4 + $0x118] sm:$0xff]  ;;  %s378_s22 = scalar_lea.vmem %s3019_s2, %s1603_s18 }
  0x1c   : > { %1658 = vmatpush1.bf16.msra.mxu0 %v2310_v19  ;;  %1762 = vmatpush1.bf16.msra.mxu1 %v2310_v19  ;;  %v2432_v53 = vpack.c.bf16 %v452_v50, %v450_v49  ;;  %v2436_v54 = vpack.c.bf16 %v457_v52, %v455_v51  ;;  %v454_v55 = vld [vmem:[%s3021_s4 + $0x100] sm:$0xff]  ;;  %v456_v56 = vld [vmem:[%s3021_s4 + $0x110] sm:$0xff]  ;;  %v459_v57 = vld [vmem:[%s3021_s4 + $0x128] sm:$0xff] }
  0x1d   : > { %1660 = vmatprep.subr.bf16.mxu0 %v2314_v20  ;;  %1764 = vmatprep.subr.bf16.mxu1 %v2314_v20  ;;  %v461_v58 = vld [vmem:[%s3021_s4 + $0x138] sm:$0xff]  ;;  %v2452_v59 = vpack.c.bf16 %v456_v56, %v454_v55  ;;  %v458_v61 = vld [vmem:[%s3021_s4 + $0x120] sm:$0xff]  ;;  %v460_v62 = vld [vmem:[%s3021_s4 + $0x130] sm:$0xff] }
  0x1e   : > { %557 = vmatprep.mubr.f32.mxu0 %v491_v44  ;;  %809 = vmatprep.mubr.f32.mxu1 %v743_v46  ;;  %v2456_v60 = vpack.c.bf16 %v461_v58, %v459_v57  ;;  %v463_v63 = vld [vmem:[%s3021_s4 + $0x148] sm:$0xff]  ;;  %v465_v0 = vld [vmem:[%s3021_s4 + $0x158] sm:$0xff]  ;;  %v2472_v1 = vpack.c.bf16 %v460_v62, %v458_v61  ;;  %v462_v4 = vld [vmem:[%s3021_s4 + $0x140] sm:$0xff] }
  0x1f   : > { %v2476_v2 = vpack.c.bf16 %v465_v0, %v463_v63  ;;  %v464_v5 = vld [vmem:[%s3021_s4 + $0x150] sm:$0xff]  ;;  %v467_v6 = vld [vmem:[%s3021_s4 + $0x168] sm:$0xff]  ;;  %v469_v9 = vld [vmem:[%s3021_s4 + $0x178] sm:$0xff] }
  0x20   : > { %1662 = vmatpush1.bf16.msra.mxu0 %v2332_v25  ;;  %1766 = vmatpush1.bf16.msra.mxu1 %v2332_v25  ;;  %v2492_v10 = vpack.c.bf16 %v464_v5, %v462_v4  ;;  %v2496_v11 = vpack.c.bf16 %v469_v9, %v467_v6  ;;  %v466_v12 = vld [vmem:[%s3021_s4 + $0x160] sm:$0xff]  ;;  %v468_v15 = vld [vmem:[%s3021_s4 + $0x170] sm:$0xff]  ;;  %v471_v16 = vld [vmem:[%s3021_s4 + $0x188] sm:$0xff] }
  0x21   : > { %1664 = vmatprep.subr.bf16.mxu0 %v2338_v26  ;;  %1768 = vmatprep.subr.bf16.mxu1 %v2338_v26  ;;  %v473_v17 = vld [vmem:[%s3021_s4 + $0x198] sm:$0xff]  ;;  %v2512_v18 = vpack.c.bf16 %v468_v15, %v466_v12  ;;  %v470_v22 = vld [vmem:[%s3021_s4 + $0x180] sm:$0xff]  ;;  %v472_v23 = vld [vmem:[%s3021_s4 + $0x190] sm:$0xff] }
  0x22   : > { %v2516_v21 = vpack.c.bf16 %v473_v17, %v471_v16  ;;  %v475_v24 = vld [vmem:[%s3021_s4 + $0x1a8] sm:$0xff]  ;;  %v477_v27 = vld [vmem:[%s3021_s4 + $0x1b8] sm:$0xff]  ;;  %v2532_v28 = vpack.c.bf16 %v472_v23, %v470_v22  ;;  %v474_v30 = vld [vmem:[%s3021_s4 + $0x1a0] sm:$0xff]  ;;  %v3025_v23 = vmov 0.0  }
  0x23   : > { %v2536_v29 = vpack.c.bf16 %v477_v27, %v475_v24  ;;  %v476_v33 = vld [vmem:[%s3021_s4 + $0x1b0] sm:$0xff]  ;;  %v479_v34 = vld [vmem:[%s3021_s4 + $0x1c8] sm:$0xff]  ;;  %v481_v35 = vld [vmem:[%s3021_s4 + $0x1d8] sm:$0xff] }
  0x24   : > { %1666 = vmatpush1.bf16.msra.mxu0 %v2355_v31  ;;  %1770 = vmatpush1.bf16.msra.mxu1 %v2355_v31  ;;  %v2552_v36 = vpack.c.bf16 %v476_v33, %v474_v30  ;;  %v2556_v39 = vpack.c.bf16 %v481_v35, %v479_v34  ;;  %v478_v40 = vld [vmem:[%s3021_s4 + $0x1c0] sm:$0xff]  ;;  %v480_v42 = vld [vmem:[%s3021_s4 + $0x1d0] sm:$0xff]  ;;  %v483_v43 = vld [vmem:[%s3021_s4 + $0x1e8] sm:$0xff] }
  0x25   : > { %1668 = vmatprep.subr.bf16.mxu0 %v2359_v32  ;;  %1772 = vmatprep.subr.bf16.mxu1 %v2359_v32  ;;  %v485_v44 = vld [vmem:[%s3021_s4 + $0x1f8] sm:$0xff]  ;;  %v2572_v46 = vpack.c.bf16 %v480_v42, %v478_v40  ;;  %v482_v50 = vld [vmem:[%s3021_s4 + $0x1e0] sm:$0xff]  ;;  %v484_v51 = vld [vmem:[%s3021_s4 + $0x1f0] sm:$0xff] }
  0x26   : > { %v2576_v49 = vpack.c.bf16 %v485_v44, %v483_v43  ;;  %v391_v52 = vld [vmem:[%s3020_s3 + $0x8] sm:$0xff]  ;;  %v393_v55 = vld [vmem:[%s3020_s3 + $0x18] sm:$0xff]  ;;  %v2592_v56 = vpack.c.bf16 %v484_v51, %v482_v50  ;;  %v390_v58 = vld [vmem:[%s3020_s3] sm:$0xff] }
  0x27   : > { %v2596_v57 = vpack.c.bf16 %v393_v55, %v391_v52  ;;  %v392_v61 = vld [vmem:[%s3020_s3 + $0x10] sm:$0xff]  ;;  %v395_v62 = vld [vmem:[%s3020_s3 + $0x28] sm:$0xff]  ;;  %v397_v63 = vld [vmem:[%s3020_s3 + $0x38] sm:$0xff] }
  0x28   : > { %1670 = vmatpush1.bf16.msra.mxu0 %v2382_v37  ;;  %1774 = vmatpush1.bf16.msra.mxu1 %v2382_v37  ;;  %v2612_v0 = vpack.c.bf16 %v392_v61, %v390_v58  ;;  %v2616_v4 = vpack.c.bf16 %v397_v63, %v395_v62  ;;  %v394_v5 = vld [vmem:[%s3020_s3 + $0x20] sm:$0xff]  ;;  %v396_v6 = vld [vmem:[%s3020_s3 + $0x30] sm:$0xff]  ;;  %v399_v9 = vld [vmem:[%s3020_s3 + $0x48] sm:$0xff] }
  0x29   : > { %1672 = vmatprep.subr.bf16.mxu0 %v2386_v38  ;;  %1776 = vmatprep.subr.bf16.mxu1 %v2386_v38  ;;  %v401_v12 = vld [vmem:[%s3020_s3 + $0x58] sm:$0xff]  ;;  %v2634_v15 = vpack.c.bf16 %v396_v6, %v394_v5  ;;  %v398_v17 = vld [vmem:[%s3020_s3 + $0x40] sm:$0xff]  ;;  %v404_v33 = vld [vmem:[%s3020_s3 + $0x70] sm:$0xff] }
  0x2a   : > { %v2638_v16 = vpack.c.bf16 %v401_v12, %v399_v9  ;;  %v405_v22 = vld [vmem:[%s3020_s3 + $0x78] sm:$0xff]  ;;  %v402_v30 = vld [vmem:[%s3020_s3 + $0x60] sm:$0xff]  ;;  %v407_v34 = vld [vmem:[%s3020_s3 + $0x88] sm:$0xff] }
  0x2b   : > { %v409_v35 = vld [vmem:[%s3020_s3 + $0x98] sm:$0xff]  ;;  %v2676_v40 = vpack.c.bf16 %v404_v33, %v402_v30  ;;  %v406_v43 = vld [vmem:[%s3020_s3 + $0x80] sm:$0xff]  ;;  %v408_v44 = vld [vmem:[%s3020_s3 + $0x90] sm:$0xff] }
  0x2c   : > { %1674 = vmatpush1.bf16.msra.mxu0 %v2412_v47  ;;  %1778 = vmatpush1.bf16.msra.mxu1 %v2412_v47  ;;  %v2680_v42 = vpack.c.bf16 %v409_v35, %v407_v34  ;;  %v411_v50 = vld [vmem:[%s3020_s3 + $0xa8] sm:$0xff]  ;;  %v413_v51 = vld [vmem:[%s3020_s3 + $0xb8] sm:$0xff]  ;;  %v2696_v52 = vpack.c.bf16 %v408_v44, %v406_v43  ;;  %v410_v58 = vld [vmem:[%s3020_s3 + $0xa0] sm:$0xff] }
  0x2d   : > { %1676 = vmatprep.subr.bf16.mxu0 %v2416_v48  ;;  %1780 = vmatprep.subr.bf16.mxu1 %v2416_v48  ;;  %v2700_v55 = vpack.c.bf16 %v413_v51, %v411_v50  ;;  %v412_v61 = vld [vmem:[%s3020_s3 + $0xb0] sm:$0xff]  ;;  %v415_v62 = vld [vmem:[%s3020_s3 + $0xc8] sm:$0xff]  ;;  %v417_v63 = vld [vmem:[%s3020_s3 + $0xd8] sm:$0xff] }
  0x2e   : > { %v2716_v5 = vpack.c.bf16 %v412_v61, %v410_v58  ;;  %v2720_v6 = vpack.c.bf16 %v417_v63, %v415_v62  ;;  %v414_v9 = vld [vmem:[%s3020_s3 + $0xc0] sm:$0xff]  ;;  %v416_v12 = vld [vmem:[%s3020_s3 + $0xd0] sm:$0xff]  ;;  %v636_v34 = vld [vmem:[%s3022_s5 + $0x8] sm:$0xff] }
  0x2f   : > { %v418_v30 = vld [vmem:[%s3020_s3 + $0xe0] sm:$0xff]  ;;  %v420_v33 = vld [vmem:[%s3020_s3 + $0xf0] sm:$0xff]  ;;  %v638_v35 = vld [vmem:[%s3022_s5 + $0x18] sm:$0xff] }
  0x30   : > { %1678 = vmatpush1.bf16.msra.mxu0 %v2432_v53  ;;  %1782 = vmatpush1.bf16.msra.mxu1 %v2432_v53  ;;  %v1612_v43 = vld [vmem:[%s3022_s5 + $0x48] sm:$0xff]  ;;  %v1614_v44 = vld [vmem:[%s3022_s5 + $0x58] sm:$0xff]  ;;  %v2767_v50 = vpack.c.bf16 %v420_v33, %v418_v30  ;;  %v635_v51 = vld [vmem:[%s3022_s5] sm:$0xff]  ;;  %v1743_v61 = vpack.c.bf16 %v638_v35, %v636_v34 }
  0x31   : > { %1680 = vmatprep.subr.bf16.mxu0 %v2436_v54  ;;  %1784 = vmatprep.subr.bf16.mxu1 %v2436_v54  ;;  %v637_v58 = vld [vmem:[%s3022_s5 + $0x10] sm:$0xff]  ;;  %v1847_v62 = vpack.c.bf16 %v1614_v44, %v1612_v43  ;;  %v1611_v63 = vld [vmem:[%s3022_s5 + $0x40] sm:$0xff]  ;;  %v1618_v30 = vld [vmem:[%s3022_s5 + $0x78] sm:$0xff] }
  0x32   : > { %3035 = vst [vmem:[#allocation4_spill] sm:$0xff] %v2767_v50  ;;  %v488_v33 = vld [vmem:[%s2781_s10] sm:$0xf]  ;;  %v1609_v34 = vld [vmem:[%s2781_s10 + $0x4] sm:$0xf]  ;;  %v1745_v35 = vpack.c.bf16 %v637_v58, %v635_v51  ;;  %v1617_v51 = vld [vmem:[%s3022_s5 + $0x70] sm:$0xff] }
  0x33   : > { %v639_v44 = vld [vmem:[%s3022_s5 + $0x20] sm:$0xff] }
  0x34   : > { %1682 = vmatpush1.bf16.msra.mxu0 %v2452_v59  ;;  %1786 = vmatpush1.bf16.msra.mxu1 %v2452_v59 }
  0x35   : > { %1684 = vmatprep.subr.bf16.mxu0 %v2456_v60  ;;  %1788 = vmatprep.subr.bf16.mxu1 %v2456_v60 }
  0x38   : > { %1686 = vmatpush1.bf16.msra.mxu0 %v2472_v1  ;;  %1790 = vmatpush1.bf16.msra.mxu1 %v2472_v1 }
  0x39   : > { %1688 = vmatprep.subr.bf16.mxu0 %v2476_v2  ;;  %1792 = vmatprep.subr.bf16.mxu1 %v2476_v2 }
  0x3c   : > { %1690 = vmatpush1.bf16.msra.mxu0 %v2492_v10  ;;  %1794 = vmatpush1.bf16.msra.mxu1 %v2492_v10 }
  0x3d   : > { %1692 = vmatprep.subr.bf16.mxu0 %v2496_v11  ;;  %1796 = vmatprep.subr.bf16.mxu1 %v2496_v11 }
  0x40   : > { %1694 = vmatpush1.bf16.msra.mxu0 %v2512_v18  ;;  %1798 = vmatpush1.bf16.msra.mxu1 %v2512_v18 }
  0x41   : > { %1696 = vmatprep.subr.bf16.mxu0 %v2516_v21  ;;  %1800 = vmatprep.subr.bf16.mxu1 %v2516_v21 }
  0x44   : > { %1698 = vmatpush1.bf16.msra.mxu0 %v2532_v28  ;;  %1802 = vmatpush1.bf16.msra.mxu1 %v2532_v28 }
  0x45   : > { %1700 = vmatprep.subr.bf16.mxu0 %v2536_v29  ;;  %1804 = vmatprep.subr.bf16.mxu1 %v2536_v29 }
  0x48   : > { %1702 = vmatpush1.bf16.msra.mxu0 %v2552_v36  ;;  %1806 = vmatpush1.bf16.msra.mxu1 %v2552_v36 }
  0x49   : > { %1704 = vmatprep.subr.bf16.mxu0 %v2556_v39  ;;  %1808 = vmatprep.subr.bf16.mxu1 %v2556_v39 }
  0x4c   : > { %1706 = vmatpush1.bf16.msra.mxu0 %v2572_v46  ;;  %1810 = vmatpush1.bf16.msra.mxu1 %v2572_v46 }
  0x4d   : > { %1708 = vmatprep.subr.bf16.mxu0 %v2576_v49  ;;  %1812 = vmatprep.subr.bf16.mxu1 %v2576_v49 }
  0x50   : > { %1710 = vmatpush1.bf16.msra.mxu0 %v2592_v56  ;;  %1814 = vmatpush1.bf16.msra.mxu1 %v2592_v56 }
  0x51   : > { %1712 = vmatprep.subr.bf16.mxu0 %v2596_v57  ;;  %1816 = vmatprep.subr.bf16.mxu1 %v2596_v57 }
  0x53   : > { %558 = vmatmul.mubr.f32.vlgmr.msra.gmra.mrb[0].mxu0 %v2395_v41  ;;  %810 = vmatmul.mubr.f32.vlgmr.msra.gmra.mrb[0].mxu1 %v2406_v45  ;;  %v400_v41 = vld [vmem:[%s3020_s3 + $0x50] sm:$0xff]  ;;  %v403_v45 = vld [vmem:[%s3020_s3 + $0x68] sm:$0xff] }
  0x54   : > { %1714 = vmatpush1.bf16.msra.mxu0 %v2612_v0  ;;  %1818 = vmatpush1.bf16.msra.mxu1 %v2612_v0  ;;  %v2656_v24 = vpack.c.bf16 %v400_v41, %v398_v17  ;;  %v2660_v27 = vpack.c.bf16 %v405_v22, %v403_v45  ;;  %v419_v17 = vld [vmem:[%s3020_s3 + $0xe8] sm:$0xff]  ;;  %v421_v41 = vld [vmem:[%s3020_s3 + $0xf8] sm:$0xff]  ;;  %v2737_v45 = vpack.c.bf16 %v416_v12, %v414_v9  ;;  %v1613_v9 = vld [vmem:[%s3022_s5 + $0x50] sm:$0xff] }
  0x55   : > { %1716 = vmatprep.subr.bf16.mxu0 %v2616_v4  ;;  %1820 = vmatprep.subr.bf16.mxu1 %v2616_v4  ;;  %v2741_v22 = vpack.c.bf16 %v421_v41, %v419_v17  ;;  %v640_v12 = vld [vmem:[%s3022_s5 + $0x28] sm:$0xff]  ;;  %v642_v17 = vld [vmem:[%s3022_s5 + $0x38] sm:$0xff]  ;;  %v1849_v43 = vpack.c.bf16 %v1613_v9, %v1611_v63  ;;  %v2823_v63 = vld [vmem:[%s2378_s9 + $0x10] sm:$0xff] }
  0x56   : > { %628 = vmatprep.mubr.f32.mxu0 %v3025_v23  ;;  %880 = vmatprep.mubr.f32.mxu1 %v3025_v23  ;;  %3033 = vst [vmem:[#allocation2_spill] sm:$0xff] %v2737_v45  ;;  %v1616_v41 = vld [vmem:[%s3022_s5 + $0x68] sm:$0xff]  ;;  %v1747_v23 = vpack.c.bf16 %v642_v17, %v640_v12  ;;  %v2826_v9 = vld [vmem:[%s2378_s9 + $0x18] sm:$0xff]  ;;  %v2828_v12 = vld [vmem:[%s378_s22] sm:$0xf] }
  0x57   : > { %3034 = vst [vmem:[#allocation3_spill] sm:$0xff] %v2741_v22 }
  0x58   : > { %1718 = vmatpush1.bf16.msra.mxu0 %v2634_v15  ;;  %1822 = vmatpush1.bf16.msra.mxu1 %v2634_v15 }
  0x59   : > { %1720 = vmatprep.subr.bf16.mxu0 %v2638_v16  ;;  %1824 = vmatprep.subr.bf16.mxu1 %v2638_v16 }
  0x5c   : > { %1722 = vmatpush1.bf16.msra.mxu0 %v2656_v24  ;;  %1826 = vmatpush1.bf16.msra.mxu1 %v2656_v24 }
  0x5d   : > { %1724 = vmatprep.subr.bf16.mxu0 %v2660_v27  ;;  %1828 = vmatprep.subr.bf16.mxu1 %v2660_v27 }
  0x60   : > { %1726 = vmatpush1.bf16.msra.mxu0 %v2676_v40  ;;  %1830 = vmatpush1.bf16.msra.mxu1 %v2676_v40 }
  0x61   : > { %1728 = vmatprep.subr.bf16.mxu0 %v2680_v42  ;;  %1832 = vmatprep.subr.bf16.mxu1 %v2680_v42 }
  0x64   : > { %1730 = vmatpush1.bf16.msra.mxu0 %v2696_v52  ;;  %1834 = vmatpush1.bf16.msra.mxu1 %v2696_v52 }
  0x65   : > { %1732 = vmatprep.subr.bf16.mxu0 %v2700_v55  ;;  %1836 = vmatprep.subr.bf16.mxu1 %v2700_v55 }
  0x68   : > { %1734 = vmatpush1.bf16.msra.mxu0 %v2716_v5  ;;  %1838 = vmatpush1.bf16.msra.mxu1 %v2716_v5 }
  0x69   : > { %1736 = vmatprep.subr.bf16.mxu0 %v2720_v6  ;;  %1840 = vmatprep.subr.bf16.mxu1 %v2720_v6 }
  0x6c   : > { %1738 = vmatpush1.bf16.msra.mxu0 %v2737_v45  ;;  %1842 = vmatpush1.bf16.msra.mxu1 %v2737_v45  ;;  %v641_v45 = vld [vmem:[%s3022_s5 + $0x30] sm:$0xff] }
  0x6d   : > { %1740 = vmatprep.subr.bf16.mxu0 %v2741_v22  ;;  %1844 = vmatprep.subr.bf16.mxu1 %v2741_v22  ;;  %v1851_v22 = vpack.c.bf16 %v1618_v30, %v1616_v41  ;;  %v1749_v58 = vpack.c.bf16 %v641_v45, %v639_v44  ;;  %v1221_v45 = vcombine.high %v2826_v9, %v2826_v9 }
  0x70   : > { %1742 = vmatpush1.bf16.msra.mxu0 %v2767_v50  ;;  %1846 = vmatpush1.bf16.msra.mxu1 %v2767_v50  ;;  %v1615_v50 = vld [vmem:[%s3022_s5 + $0x60] sm:$0xff] }
  0x71   : > { %1744 = vmatprep.subr.bf16.mxu0 %v1743_v61  ;;  %1848 = vmatprep.subr.bf16.mxu1 %v1847_v62  ;;  %v1853_v61 = vpack.c.bf16 %v1617_v51, %v1615_v50  ;;  %v3036_v62 = vmov 0.0  }
  0x73   : > { %629 = vmatmul.mubr.f32.vlgmr.msra.gmra.mrb[0].mxu0 %v488_v33  ;;  %881 = vmatmul.mubr.f32.vlgmr.msra.gmra.mrb[0].mxu1 %v1609_v34 }
  0x74   : > { %1746 = vmatpush1.bf16.msra.mxu0 %v1745_v35  ;;  %1850 = vmatpush1.bf16.msra.mxu1 %v1849_v43 }
  0x75   : > { %1748 = vmatprep.subr.bf16.mxu0 %v1747_v23  ;;  %1852 = vmatprep.subr.bf16.mxu1 %v1851_v22  ;;  %v982_v23 = vcombine.high %v2823_v63, %v2823_v63 }
  0x76   : > { %711 = vmatprep.mubr.f32.mxu0 %v3036_v62  ;;  %960 = vmatprep.mubr.f32.mxu1 %v3036_v62 }
  0x78   : > { %1750 = vmatpush1.bf16.msra.mxu0 %v1749_v58  ;;  %1854 = vmatpush1.bf16.msra.mxu1 %v1853_v61 }
  0x79   : > { %1856 = vmatprep.subr.bf16.mxu0 %v2250_v3  ;;  %1960 = vmatprep.subr.bf16.mxu1 %v2250_v3  ;;  %v1624_v3 = vld [vmem:[%s3022_s5 + $0x88] sm:$0xff] }
  0x7b   : > { %1608 = vmatmul.mubr.msk.f32.vlgmr.msra.gmra.mrb[0].mxu0 %vm643_vm0, %v2828_v12  ;;  %1619 = vmatmul.mubr.msk.f32.vlgmr.msra.gmra.mrb[0].mxu1 %vm643_vm0, %v2828_v12 }
  0x7c   : > { %1858 = vmatpush1.bf16.msra.mxu0 %v2261_v7  ;;  %1962 = vmatpush1.bf16.msra.mxu1 %v2261_v7  ;;  %v1626_v7 = vld [vmem:[%s3022_s5 + $0x98] sm:$0xff] }
  0x7d   : > { %1860 = vmatprep.subr.bf16.mxu0 %v2263_v8  ;;  %1964 = vmatprep.subr.bf16.mxu1 %v2263_v8  ;;  %v1636_v8 = vld [vmem:[%s3022_s5 + $0xc8] sm:$0xff] }
  0x7e   : > { %1048 = vmatprep.mubr.f32.mxu0 %v982_v23  ;;  %1287 = vmatprep.mubr.f32.mxu1 %v1221_v45 }
  0x80   : > { %1862 = vmatpush1.bf16.msra.mxu0 %v2286_v13  ;;  %1966 = vmatpush1.bf16.msra.mxu1 %v2286_v13  ;;  %v1638_v13 = vld [vmem:[%s3022_s5 + $0xd8] sm:$0xff] }
  0x81   : > { %1864 = vmatprep.subr.bf16.mxu0 %v2291_v14  ;;  %1968 = vmatprep.subr.bf16.mxu1 %v2291_v14  ;;  %v3037_v14 = vld [vmem:[#allocation2_spill] sm:$0xff] }
  0x84   : > { %1866 = vmatpush1.bf16.msra.mxu0 %v2310_v19  ;;  %1970 = vmatpush1.bf16.msra.mxu1 %v2310_v19  ;;  %v1623_v19 = vld [vmem:[%s3022_s5 + $0x80] sm:$0xff] }
  0x85   : > { %1868 = vmatprep.subr.bf16.mxu0 %v2314_v20  ;;  %1972 = vmatprep.subr.bf16.mxu1 %v2314_v20  ;;  %v1625_v20 = vld [vmem:[%s3022_s5 + $0x90] sm:$0xff] }
  0x88   : > { %1870 = vmatpush1.bf16.msra.mxu0 %v2332_v25  ;;  %1974 = vmatpush1.bf16.msra.mxu1 %v2332_v25  ;;  %v3038_v25 = vld [vmem:[#allocation3_spill] sm:$0xff] }
  0x89   : > { %1872 = vmatprep.subr.bf16.mxu0 %v2338_v26  ;;  %1976 = vmatprep.subr.bf16.mxu1 %v2338_v26  ;;  %v1951_v26 = vpack.c.bf16 %v1626_v7, %v1624_v3 }
  0x8c   : > { %1874 = vmatpush1.bf16.msra.mxu0 %v2355_v31  ;;  %1978 = vmatpush1.bf16.msra.mxu1 %v2355_v31  ;;  %v2055_v31 = vpack.c.bf16 %v1638_v13, %v1636_v8 }
  0x8d   : > { %1876 = vmatprep.subr.bf16.mxu0 %v2359_v32  ;;  %1980 = vmatprep.subr.bf16.mxu1 %v2359_v32  ;;  %v1635_v32 = vld [vmem:[%s3022_s5 + $0xc0] sm:$0xff] }
  0x90   : > { %1878 = vmatpush1.bf16.msra.mxu0 %v2382_v37  ;;  %1982 = vmatpush1.bf16.msra.mxu1 %v2382_v37  ;;  %v1637_v37 = vld [vmem:[%s3022_s5 + $0xd0] sm:$0xff] }
  0x91   : > { %1880 = vmatprep.subr.bf16.mxu0 %v2386_v38  ;;  %1984 = vmatprep.subr.bf16.mxu1 %v2386_v38  ;;  %v1628_v38 = vld [vmem:[%s3022_s5 + $0xa8] sm:$0xff] }
  0x94   : > { %1882 = vmatpush1.bf16.msra.mxu0 %v2412_v47  ;;  %1986 = vmatpush1.bf16.msra.mxu1 %v2412_v47  ;;  %v1630_v47 = vld [vmem:[%s3022_s5 + $0xb8] sm:$0xff] }
  0x95   : > { %1884 = vmatprep.subr.bf16.mxu0 %v2416_v48  ;;  %1988 = vmatprep.subr.bf16.mxu1 %v2416_v48  ;;  %v1640_v48 = vld [vmem:[%s3022_s5 + $0xe8] sm:$0xff] }
  0x98   : > { %1886 = vmatpush1.bf16.msra.mxu0 %v2432_v53  ;;  %1990 = vmatpush1.bf16.msra.mxu1 %v2432_v53  ;;  %v1642_v53 = vld [vmem:[%s3022_s5 + $0xf8] sm:$0xff] }
  0x99   : > { %1888 = vmatprep.subr.bf16.mxu0 %v2436_v54  ;;  %1992 = vmatprep.subr.bf16.mxu1 %v2436_v54  ;;  %v3039_v54 = vld [vmem:[#allocation4_spill] sm:$0xff] }
  0x9c   : > { %1890 = vmatpush1.bf16.msra.mxu0 %v2452_v59  ;;  %1994 = vmatpush1.bf16.msra.mxu1 %v2452_v59  ;;  %v1621_v59 = vld [vmem:[%s2781_s10 + $0x8] sm:$0xf] }
  0x9d   : > { %1892 = vmatprep.subr.bf16.mxu0 %v2456_v60  ;;  %1996 = vmatprep.subr.bf16.mxu1 %v2456_v60  ;;  %v1633_v60 = vld [vmem:[%s2781_s10 + $0xc] sm:$0xf] }
  0xa0   : > { %1894 = vmatpush1.bf16.msra.mxu0 %v2472_v1  ;;  %1998 = vmatpush1.bf16.msra.mxu1 %v2472_v1  ;;  %v1953_v1 = vpack.c.bf16 %v1625_v20, %v1623_v19 }
  0xa1   : > { %1896 = vmatprep.subr.bf16.mxu0 %v2476_v2  ;;  %2000 = vmatprep.subr.bf16.mxu1 %v2476_v2  ;;  %v2057_v2 = vpack.c.bf16 %v1637_v37, %v1635_v32 }
  0xa4   : > { %1898 = vmatpush1.bf16.msra.mxu0 %v2492_v10  ;;  %2002 = vmatpush1.bf16.msra.mxu1 %v2492_v10  ;;  %v1627_v10 = vld [vmem:[%s3022_s5 + $0xa0] sm:$0xff] }
  0xa5   : > { %1900 = vmatprep.subr.bf16.mxu0 %v2496_v11  ;;  %2004 = vmatprep.subr.bf16.mxu1 %v2496_v11  ;;  %v1955_v11 = vpack.c.bf16 %v1630_v47, %v1628_v38 }
  0xa8   : > { %1902 = vmatpush1.bf16.msra.mxu0 %v2512_v18  ;;  %2006 = vmatpush1.bf16.msra.mxu1 %v2512_v18  ;;  %v2059_v18 = vpack.c.bf16 %v1642_v53, %v1640_v48 }
  0xa9   : > { %1904 = vmatprep.subr.bf16.mxu0 %v2516_v21  ;;  %2008 = vmatprep.subr.bf16.mxu1 %v2516_v21  ;;  %v1629_v21 = vld [vmem:[%s3022_s5 + $0xb0] sm:$0xff] }
  0xac   : > { %1906 = vmatpush1.bf16.msra.mxu0 %v2532_v28  ;;  %2010 = vmatpush1.bf16.msra.mxu1 %v2532_v28  ;;  %v1639_v28 = vld [vmem:[%s3022_s5 + $0xe0] sm:$0xff] }
  0xad   : > { %1908 = vmatprep.subr.bf16.mxu0 %v2536_v29  ;;  %2012 = vmatprep.subr.bf16.mxu1 %v2536_v29  ;;  %v1641_v29 = vld [vmem:[%s3022_s5 + $0xf0] sm:$0xff] }
  0xb0   : > { %1910 = vmatpush1.bf16.msra.mxu0 %v2552_v36  ;;  %2014 = vmatpush1.bf16.msra.mxu1 %v2552_v36  ;;  %v1957_v36 = vpack.c.bf16 %v1629_v21, %v1627_v10 }
  0xb1   : > { %1912 = vmatprep.subr.bf16.mxu0 %v2556_v39  ;;  %2016 = vmatprep.subr.bf16.mxu1 %v2556_v39  ;;  %v2061_v39 = vpack.c.bf16 %v1641_v29, %v1639_v28 }
  0xb4   : > { %1914 = vmatpush1.bf16.msra.mxu0 %v2572_v46  ;;  %2018 = vmatpush1.bf16.msra.mxu1 %v2572_v46  ;;  %v721_v46 = vlaneseq }
  0xb5   : > { %1916 = vmatprep.subr.bf16.mxu0 %v2576_v49  ;;  %2020 = vmatprep.subr.bf16.mxu1 %v2576_v49 }
  0xb6   : > { %v722_v49 = vshrl.u32 %v721_v46, 7 }
  0xb8   : > { %1918 = vmatpush1.bf16.msra.mxu0 %v2592_v56  ;;  %2022 = vmatpush1.bf16.msra.mxu1 %v2592_v56  ;;  %v723_v56 = vsub.s32 0, %v722_v49 }
  0xb9   : > { %1920 = vmatprep.subr.bf16.mxu0 %v2596_v57  ;;  %2024 = vmatprep.subr.bf16.mxu1 %v2596_v57  ;;  %v486_v57 = vld [vmem:[%s3023_s6] sm:$0x3] }
  0xbb   : > { %1049 = vmatmul.mubr.f32.vlgmr.msra.gmra.mrb[2].mxu0 %v2823_v63  ;;  %1288 = vmatmul.mubr.f32.vlgmr.msra.gmra.mrb[2].mxu1 %v2826_v9 }
  0xbc   : > { %1922 = vmatpush1.bf16.msra.mxu0 %v2612_v0  ;;  %2026 = vmatpush1.bf16.msra.mxu1 %v2612_v0  ;;  %v727_v0 = vsub.s32 1, %v722_v49 }
  0xbd   : > { %1924 = vmatprep.subr.bf16.mxu0 %v2616_v4  ;;  %2028 = vmatprep.subr.bf16.mxu1 %v2616_v4  ;;  %v724_v4 = vrot.slane %v486_v57, %v723_v56 }
  0xbe   : > { %1119 = vmatprep.mubr.f32.mxu0 %v3036_v62  ;;  %1358 = vmatprep.mubr.f32.mxu1 %v3036_v62 }
  0xc0   : > { %1926 = vmatpush1.bf16.msra.mxu0 %v2634_v15  ;;  %2030 = vmatpush1.bf16.msra.mxu1 %v2634_v15  ;;  %v728_v15 = vrot.slane %v486_v57, %v727_v0 }
  0xc1   : > { %1928 = vmatprep.subr.bf16.mxu0 %v2638_v16  ;;  %2032 = vmatprep.subr.bf16.mxu1 %v2638_v16 }
  0xc4   : > { %1930 = vmatpush1.bf16.msra.mxu0 %v2656_v24  ;;  %2034 = vmatpush1.bf16.msra.mxu1 %v2656_v24 }
  0xc5   : > { %1932 = vmatprep.subr.bf16.mxu0 %v2660_v27  ;;  %2036 = vmatprep.subr.bf16.mxu1 %v2660_v27 }
  0xc8   : > { %1934 = vmatpush1.bf16.msra.mxu0 %v2676_v40  ;;  %2038 = vmatpush1.bf16.msra.mxu1 %v2676_v40 }
  0xc9   : > { %1936 = vmatprep.subr.bf16.mxu0 %v2680_v42  ;;  %2040 = vmatprep.subr.bf16.mxu1 %v2680_v42 }
  0xcc   : > { %1938 = vmatpush1.bf16.msra.mxu0 %v2696_v52  ;;  %2042 = vmatpush1.bf16.msra.mxu1 %v2696_v52 }
  0xcd   : > { %1940 = vmatprep.subr.bf16.mxu0 %v2700_v55  ;;  %2044 = vmatprep.subr.bf16.mxu1 %v2700_v55 }
  0xd0   : > { %1942 = vmatpush1.bf16.msra.mxu0 %v2716_v5  ;;  %2046 = vmatpush1.bf16.msra.mxu1 %v2716_v5 }
  0xd1   : > { %1944 = vmatprep.subr.bf16.mxu0 %v2720_v6  ;;  %2048 = vmatprep.subr.bf16.mxu1 %v2720_v6 }
  0xd4   : > { %1946 = vmatpush1.bf16.msra.mxu0 %v3037_v14  ;;  %2050 = vmatpush1.bf16.msra.mxu1 %v3037_v14 }
  0xd5   : > { %1948 = vmatprep.subr.bf16.mxu0 %v3038_v25  ;;  %2052 = vmatprep.subr.bf16.mxu1 %v3038_v25 }
  0xd8   : > { %1950 = vmatpush1.bf16.msra.mxu0 %v3039_v54  ;;  %2054 = vmatpush1.bf16.msra.mxu1 %v3039_v54 }
  0xd9   : > { %1952 = vmatprep.subr.bf16.mxu0 %v1951_v26  ;;  %2056 = vmatprep.subr.bf16.mxu1 %v2055_v31 }
  0xdb   : > { %1120 = vmatmul.mubr.f32.vlgmr.msra.gmra.mrb[2].mxu0 %v1621_v59  ;;  %1359 = vmatmul.mubr.f32.vlgmr.msra.gmra.mrb[2].mxu1 %v1633_v60 }
  0xdc   : > { %1954 = vmatpush1.bf16.msra.mxu0 %v1953_v1  ;;  %2058 = vmatpush1.bf16.msra.mxu1 %v2057_v2 }
  0xdd   : > { %1956 = vmatprep.subr.bf16.mxu0 %v1955_v11  ;;  %2060 = vmatprep.subr.bf16.mxu1 %v2059_v18 }
  0xde   : > { %1199 = vmatprep.mubr.f32.mxu0 %v3036_v62  ;;  %1438 = vmatprep.mubr.f32.mxu1 %v3036_v62 }
  0xe0   : > { %1958 = vmatpush1.bf16.msra.mxu0 %v1957_v36  ;;  %2062 = vmatpush1.bf16.msra.mxu1 %v2061_v39 }
  0xe3   : > { %1631 = vmatmul.mubr.msk.f32.vlgmr.msra.gmra.mrb[2].mxu0 %vm643_vm0, %v2828_v12  ;;  %1643 = vmatmul.mubr.msk.f32.vlgmr.msra.gmra.mrb[2].mxu1 %vm643_vm0, %v2828_v12 }
 0x14e   : > { %v713_v16 = vpop.f32.mrb[0].mxu0  ;;  %v962_v24 = vpop.f32.mrb[0].mxu1 }
 0x14f   : > { %v731_v27 = vadd.f32 %v724_v4, %v713_v16  ;;  %v969_v40 = vadd.f32 %v962_v24, %v724_v4  ;;  %v715_v42 = vpop.f32.mrb[1].mxu0  ;;  %v964_v52 = vpop.f32.mrb[1].mxu1 }
 0x150   : > { %v732_v55 = vadd.f32 %v728_v15, %v715_v42  ;;  %v970_v5 = vadd.f32 %v964_v52, %v728_v15 }
 0x152   : > { %v735_v6 = vcombine.low %v731_v27, %v732_v55  ;;  %v973_v22 = vcombine.low %v969_v40, %v970_v5 }
 0x154   : > { %737 = vst [vmem:[%s388_s16] sm:$0xff] %v735_v6  ;;  %1620 = vst [vmem:[%s388_s16 + $0x8] sm:$0xff] %v973_v22 }
 0x1b6   : > { %v1201_v50 = vpop.f32.mrb[2].mxu0  ;;  %v1440_v17 = vpop.f32.mrb[2].mxu1 }
 0x1b7   : > { %v1208_v41 = vadd.f32 %v1201_v50, %v724_v4  ;;  %v1447_v30 = vadd.f32 %v1440_v17, %v724_v4  ;;  %v1203_v33 = vpop.f32.mrb[3].mxu0  ;;  %v1442_v34 = vpop.f32.mrb[3].mxu1 }
 0x1b8   : > { %v1209_v35 = vadd.f32 %v1203_v33, %v728_v15  ;;  %v1448_v43 = vadd.f32 %v1442_v34, %v728_v15 }
 0x1ba   : > { %v1212_v44 = vcombine.low %v1208_v41, %v1209_v35  ;;  %v1451_v51 = vcombine.low %v1447_v30, %v1448_v43 }
 0x1bc   : > { %1632 = vst [vmem:[%s388_s16 + $0x10] sm:$0xff] %v1212_v44  ;;  %1644 = vst [vmem:[%s388_s16 + $0x18] sm:$0xff] %v1451_v51 }
 0x1bd PF: > { %s17_s28 = sadd.s32 1, %s2162_s28   ;;  %s3040_s24 = smov %s2154_s26 }
 0x1be   : > { %p14_p8 = scmp.ge.s32.totalorder %s17_s28, 10   ;;  %s3041_s25 = smov %s2158_s27 }
 0x1bf   : > { %s3042_s26 = smov %s3045_s29  ;;  %s3043_s27 = smov %s3049_s30 }
 0x1c0   :  { %16 = sbr.rel (!%p14_p8) target bundleno = 3 (0x3), region = 96 }

</bundles_post_ra>
